<compile_context>
chip_gen: v6e
topology: v6e:2x2x1
jax: 0.10.0
libtpu: 0.0.40
codegen_flags: <defaults>
</compile_context>

<pallas_src>
import jax
import jax.numpy as jnp
from jax.experimental import pallas as pl
from jax.experimental.pallas import tpu as pltpu  # noqa: F401  (TPU backend assumed)

# ---- config consistent with SimpleViT(token_size, num_classes, dim, ...) ----
B = 2            # batch
N = 8            # token_size
D = 32           # dim
HEADS = 2        # heads
DH = 16          # dim_head
INNER = HEADS * DH
MLP = 64         # mlp_dim
DEPTH = 2        # depth
C = 10           # num_classes
CP = 128         # lane-dense padded class dimension (multiple of 128)
F = N * D        # flattened feature size (256)
VECW = F         # packed parameter-slab lane width (>= D, MLP, F)
EPS = 1e-5
SCALE = DH ** -0.5

# packed parameter-slab row layout (one (NUM_ROWS, VECW) f32 kernel input)
ROW_POS = 0                         # N rows : pos_embedding, lanes [0:D]
ROWS_PER_LAYER = 6                  # ln1_g, ln1_b, ln2_g, ln2_b, b1, b2
ROW_LAYER0 = N
ROW_FIN_G = N + ROWS_PER_LAYER * DEPTH
ROW_FIN_B = ROW_FIN_G + 1
ROW_BN_G = ROW_FIN_G + 2
ROW_BN_B = ROW_FIN_G + 3
NUM_ROWS = ROW_FIN_G + 4            # 24 (multiple of 8)


def _layernorm(x, g, b):
    mu = jnp.mean(x, axis=-1, keepdims=True)
    var = jnp.mean((x - mu) ** 2, axis=-1, keepdims=True)
    return (x - mu) * jax.lax.rsqrt(var + EPS) * g + b


def _gelu(x):
    # exact (erf) GELU, matching nn.GELU() default.  tanh-approx was evaluated
    # but rejected: BatchNorm over batch=2 can amplify the error past 1e-3.
    return 0.5 * x * (1.0 + jax.lax.erf(x / jnp.sqrt(2.0).astype(x.dtype)))


# --------------------------- fused Pallas kernel ---------------------------

def vit_kernel(feats_ref, wqkv_ref, wout_ref, w1_ref, w2_ref, vec_ref, wcls_ref,
               bn_out_ref, logits_ref):

    def vrow(r, width, nrows=1):
        # full-lane row load from the packed slab + value slice (cheap, static)
        return vec_ref[r:r + nrows, :][:, 0:width]

    # pos-embedding add, fold batch into rows: (B, N, D) -> (B*N, D)
    pos = vrow(ROW_POS, D, N)                                     # (N, D)
    x = (feats_ref[...] + pos).reshape(B * N, D)

    for l in range(DEPTH):                                        # static unroll
        base = ROW_LAYER0 + ROWS_PER_LAYER * l
        g1 = vrow(base + 0, D)
        be1 = vrow(base + 1, D)
        g2 = vrow(base + 2, D)
        be2 = vrow(base + 3, D)
        b1 = vrow(base + 4, MLP)
        b2 = vrow(base + 5, D)

        # ------------------------- attention -------------------------
        xn = _layernorm(x, g1, be1)
        qkv = jnp.dot(xn, wqkv_ref[l],
                      preferred_element_type=jnp.float32)         # (B*N, 3*INNER)

        # fold heads into the einsum batch dim: (HEADS*B, N, DH), index h*B + b
        def stack_heads(col0):
            parts = [qkv[:, col0 + h * DH:col0 + (h + 1) * DH].reshape(B, N, DH)
                     for h in range(HEADS)]
            return parts[0] if HEADS == 1 else jnp.concatenate(parts, axis=0)

        q = stack_heads(0)
        k = stack_heads(INNER)
        v = stack_heads(2 * INNER)

        dots = jnp.einsum('bqd,bkd->bqk', q, k,
                          preferred_element_type=jnp.float32) * SCALE
        dots = dots - jnp.max(dots, axis=-1, keepdims=True)
        e = jnp.exp(dots)
        # exact reciprocal kept on purpose (see note on BatchNorm amplification)
        attn = e * pl.reciprocal(jnp.sum(e, axis=-1, keepdims=True), approx=False)
        o = jnp.einsum('bqk,bkd->bqd', attn, v,
                       preferred_element_type=jnp.float32)        # (HEADS*B, N, DH)

        # single output projection: concat heads along features -> one dot
        o_feat = jnp.concatenate(
            [o[h * B:(h + 1) * B].reshape(B * N, DH) for h in range(HEADS)],
            axis=-1)                                              # (B*N, INNER)
        x = x + jnp.dot(o_feat, wout_ref[l], preferred_element_type=jnp.float32)

        # ------------------------ feed-forward ------------------------
        xn = _layernorm(x, g2, be2)
        h1 = jnp.dot(xn, w1_ref[l], preferred_element_type=jnp.float32) + b1
        h1 = _gelu(h1)
        x = x + jnp.dot(h1, w2_ref[l], preferred_element_type=jnp.float32) + b2

    # ------------------------- final LayerNorm -------------------------
    x = _layernorm(x, vrow(ROW_FIN_G, D), vrow(ROW_FIN_B, D))     # (B*N, D)

    # ---- flatten to a lane-dense (B, F) slab (rows of x are (b, n) b-major) ----
    x_flat = jnp.concatenate(
        [jnp.concatenate([x[b * N + n:b * N + n + 1, :] for n in range(N)],
                         axis=-1)
         for b in range(B)],
        axis=0)                                                   # (B, F)

    # ---- BatchNorm1d (training batch stats) + single-matmul classifier ----
    gamma = vrow(ROW_BN_G, F)                                     # (1, F)
    beta = vrow(ROW_BN_B, F)
    mu = jnp.mean(x_flat, axis=0, keepdims=True)
    var = jnp.mean((x_flat - mu) ** 2, axis=0, keepdims=True)     # biased var
    y = (x_flat - mu) * jax.lax.rsqrt(var + EPS) * gamma + beta   # (B, F)

    bn_out_ref[...] = y                                           # lane-dense store
    logits_ref[...] = jnp.dot(y, wcls_ref[...],
                              preferred_element_type=jnp.float32)  # (B, CP)


# --------------------------- wrapper ---------------------------

def simple_vit_forward(feats, params):
    # pack the small parameter vectors into one tile-aligned slab (trace-time)
    def row(v):
        v = v.reshape(1, -1)
        return jnp.pad(v, ((0, 0), (0, VECW - v.shape[1])))

    rows = [jnp.pad(params["pos_embedding"], ((0, 0), (0, VECW - D)))]
    for l in range(DEPTH):
        rows += [row(params["ln1_g"][l]), row(params["ln1_b"][l]),
                 row(params["ln2_g"][l]), row(params["ln2_b"][l]),
                 row(params["b1"][l]), row(params["b2"][l])]
    rows += [row(params["final_ln_g"]), row(params["final_ln_b"]),
             row(params["bn_gamma"]), row(params["bn_beta"])]
    vec_slab = jnp.concatenate(rows, axis=0)                      # (NUM_ROWS, VECW)
    assert vec_slab.shape == (NUM_ROWS, VECW)

    # lane-dense classifier weight: pad (F, C) -> (F, 128)
    wcls_pad = jnp.zeros((F, CP), jnp.float32).at[:, :C].set(params["wcls"])

    bn_out, logits_pad = pl.pallas_call(
        vit_kernel,
        out_shape=(jax.ShapeDtypeStruct((B, F), jnp.float32),
                   jax.ShapeDtypeStruct((B, CP), jnp.float32)),
    )(feats, params["wqkv"], params["wout"], params["w1"], params["w2"],
      vec_slab, wcls_pad)

    return bn_out, logits_pad[:, :C]


# --------------------------- reference (plain JAX) ---------------------------

def simple_vit_reference(feats, params):
    x = feats + params["pos_embedding"][None, :, :]
    for l in range(DEPTH):
        xn = _layernorm(x, params["ln1_g"][l], params["ln1_b"][l])
        qkv = xn @ params["wqkv"][l]
        q, k, v = jnp.split(qkv, 3, axis=-1)

        def split_heads(t):
            return t.reshape(B, N, HEADS, DH).transpose(0, 2, 1, 3)

        q, k, v = map(split_heads, (q, k, v))
        dots = jnp.einsum("bhqd,bhkd->bhqk", q, k) * SCALE
        attn = jax.nn.softmax(dots, axis=-1)
        out = jnp.einsum("bhqk,bhkd->bhqd", attn, v)
        out = out.transpose(0, 2, 1, 3).reshape(B, N, INNER)
        x = x + out @ params["wout"][l]

        xn = _layernorm(x, params["ln2_g"][l], params["ln2_b"][l])
        h = _gelu(xn @ params["w1"][l] + params["b1"][l])
        x = x + h @ params["w2"][l] + params["b2"][l]

    x = _layernorm(x, params["final_ln_g"], params["final_ln_b"])
    x = x.reshape(B, F)
    mu = jnp.mean(x, axis=0, keepdims=True)
    var = jnp.mean((x - mu) ** 2, axis=0, keepdims=True)
    bn = (x - mu) * jax.lax.rsqrt(var + EPS) * params["bn_gamma"] + params["bn_beta"]
    return bn, bn @ params["wcls"]


# --------------------------- param init ---------------------------

def init_params(key):
    k_pos, k_qkv, k_out, k_w1, k_w2, k_cls = jax.random.split(key, 6)
    return {
        "pos_embedding": 0.05 * jax.random.normal(k_pos, (N, D), jnp.float32),
        # per-layer weights stacked along a leading DEPTH axis
        "ln1_g": jnp.ones((DEPTH, 1, D), jnp.float32),
        "ln1_b": jnp.zeros((DEPTH, 1, D), jnp.float32),
        "wqkv": 0.05 * jax.random.normal(k_qkv, (DEPTH, D, 3 * INNER), jnp.float32),
        "wout": 0.05 * jax.random.normal(k_out, (DEPTH, INNER, D), jnp.float32),
        "ln2_g": jnp.ones((DEPTH, 1, D), jnp.float32),
        "ln2_b": jnp.zeros((DEPTH, 1, D), jnp.float32),
        "w1": 0.05 * jax.random.normal(k_w1, (DEPTH, D, MLP), jnp.float32),
        "b1": jnp.zeros((DEPTH, 1, MLP), jnp.float32),
        "w2": 0.05 * jax.random.normal(k_w2, (DEPTH, MLP, D), jnp.float32),
        "b2": jnp.zeros((DEPTH, 1, D), jnp.float32),
        # final LN + bottleneck (BatchNorm1d: weight=1, bias frozen 0)
        "final_ln_g": jnp.ones((1, D), jnp.float32),
        "final_ln_b": jnp.zeros((1, D), jnp.float32),
        "bn_gamma": jnp.ones((1, F), jnp.float32),
        "bn_beta": jnp.zeros((1, F), jnp.float32),
        "wcls": 0.05 * jax.random.normal(k_cls, (F, C), jnp.float32),
    }


if __name__ == "__main__":
    key = jax.random.PRNGKey(0)
    pkey, xkey = jax.random.split(key)
    params = init_params(pkey)
    feats = jax.random.normal(xkey, (B, N, D), jnp.float32)

    bn_out, logits = jax.jit(simple_vit_forward)(feats, params)
    jax.block_until_ready((bn_out, logits))

    ref_bn, ref_logits = simple_vit_reference(feats, params)
    assert bn_out.shape == (B, F) and logits.shape == (B, C)
    assert jnp.allclose(bn_out, ref_bn, atol=1e-3, rtol=1e-3)
    assert jnp.allclose(logits, ref_logits, atol=1e-3, rtol=1e-3)

    print("KERNEL_OK")
</pallas_src>

<mosaic_0001>
module attributes {stable_mosaic.version = 11 : i64} {
  func.func @vit_kernel(%arg0: memref<2x8x32xf32, #tpu.memory_space<vmem>>, %arg1: memref<2x32x96xf32, #tpu.memory_space<vmem>>, %arg2: memref<2x32x32xf32, #tpu.memory_space<vmem>>, %arg3: memref<2x32x64xf32, #tpu.memory_space<vmem>>, %arg4: memref<2x64x32xf32, #tpu.memory_space<vmem>>, %arg5: memref<24x256xf32, #tpu.memory_space<vmem>>, %arg6: memref<256x128xf32, #tpu.memory_space<vmem>>, %arg7: memref<2x256xf32, #tpu.memory_space<vmem>>, %arg8: memref<2x128xf32, #tpu.memory_space<vmem>>) attributes {dimension_semantics = [], scalar_prefetch = 0 : i64, scratch_operands = 0 : i64, tpu.core_type = #tpu.core_type<tc>} {
    %c0 = arith.constant 0 : index
    %c0_0 = arith.constant 0 : index
    %0 = vector.load %arg5[%c0, %c0_0] : memref<24x256xf32, #tpu.memory_space<vmem>>, vector<8x256xf32>
    %1 = vector.extract_strided_slice %0 {offsets = [0, 0], sizes = [8, 32], strides = [1, 1]} : vector<8x256xf32> to vector<8x32xf32>
    %c0_1 = arith.constant 0 : index
    %c0_2 = arith.constant 0 : index
    %c0_3 = arith.constant 0 : index
    %2 = vector.load %arg0[%c0_1, %c0_2, %c0_3] : memref<2x8x32xf32, #tpu.memory_space<vmem>>, vector<2x8x32xf32>
    %3 = vector.shape_cast %1 : vector<8x32xf32> to vector<1x8x32xf32>
    %4 = vector.broadcast %3 : vector<1x8x32xf32> to vector<2x8x32xf32>
    %5 = arith.addf %2, %4 : vector<2x8x32xf32>
    %6 = vector.shape_cast %5 : vector<2x8x32xf32> to vector<16x32xf32>
    %c8 = arith.constant 8 : index
    %c0_4 = arith.constant 0 : index
    %7 = vector.load %arg5[%c8, %c0_4] : memref<24x256xf32, #tpu.memory_space<vmem>>, vector<1x256xf32>
    %8 = vector.extract_strided_slice %7 {offsets = [0, 0], sizes = [1, 32], strides = [1, 1]} : vector<1x256xf32> to vector<1x32xf32>
    %c9 = arith.constant 9 : index
    %c0_5 = arith.constant 0 : index
    %9 = vector.load %arg5[%c9, %c0_5] : memref<24x256xf32, #tpu.memory_space<vmem>>, vector<1x256xf32>
    %10 = vector.extract_strided_slice %9 {offsets = [0, 0], sizes = [1, 32], strides = [1, 1]} : vector<1x256xf32> to vector<1x32xf32>
    %c10 = arith.constant 10 : index
    %c0_6 = arith.constant 0 : index
    %11 = vector.load %arg5[%c10, %c0_6] : memref<24x256xf32, #tpu.memory_space<vmem>>, vector<1x256xf32>
    %12 = vector.extract_strided_slice %11 {offsets = [0, 0], sizes = [1, 32], strides = [1, 1]} : vector<1x256xf32> to vector<1x32xf32>
    %c11 = arith.constant 11 : index
    %c0_7 = arith.constant 0 : index
    %13 = vector.load %arg5[%c11, %c0_7] : memref<24x256xf32, #tpu.memory_space<vmem>>, vector<1x256xf32>
    %14 = vector.extract_strided_slice %13 {offsets = [0, 0], sizes = [1, 32], strides = [1, 1]} : vector<1x256xf32> to vector<1x32xf32>
    %c12 = arith.constant 12 : index
    %c0_8 = arith.constant 0 : index
    %15 = vector.load %arg5[%c12, %c0_8] : memref<24x256xf32, #tpu.memory_space<vmem>>, vector<1x256xf32>
    %16 = vector.extract_strided_slice %15 {offsets = [0, 0], sizes = [1, 64], strides = [1, 1]} : vector<1x256xf32> to vector<1x64xf32>
    %c13 = arith.constant 13 : index
    %c0_9 = arith.constant 0 : index
    %17 = vector.load %arg5[%c13, %c0_9] : memref<24x256xf32, #tpu.memory_space<vmem>>, vector<1x256xf32>
    %18 = vector.extract_strided_slice %17 {offsets = [0, 0], sizes = [1, 32], strides = [1, 1]} : vector<1x256xf32> to vector<1x32xf32>
    %cst = arith.constant dense<0.000000e+00> : vector<16xf32>
    %19 = vector.multi_reduction <add>, %6, %cst [1] : vector<16x32xf32> to vector<16xf32>
    %20 = vector.shape_cast %19 : vector<16xf32> to vector<16x1xf32>
    %cst_10 = arith.constant 3.200000e+01 : f32
    %21 = vector.broadcast %cst_10 : f32 to vector<16x1xf32>
    %22 = arith.divf %20, %21 : vector<16x1xf32>
    %23 = vector.broadcast %22 : vector<16x1xf32> to vector<16x32xf32>
    %24 = arith.subf %6, %23 : vector<16x32xf32>
    %25 = arith.mulf %24, %24 : vector<16x32xf32>
    %cst_11 = arith.constant dense<0.000000e+00> : vector<16xf32>
    %26 = vector.multi_reduction <add>, %25, %cst_11 [1] : vector<16x32xf32> to vector<16xf32>
    %27 = vector.shape_cast %26 : vector<16xf32> to vector<16x1xf32>
    %cst_12 = arith.constant 3.200000e+01 : f32
    %28 = vector.broadcast %cst_12 : f32 to vector<16x1xf32>
    %29 = arith.divf %27, %28 : vector<16x1xf32>
    %30 = vector.broadcast %22 : vector<16x1xf32> to vector<16x32xf32>
    %31 = arith.subf %6, %30 : vector<16x32xf32>
    %cst_13 = arith.constant 9.99999974E-6 : f32
    %32 = vector.broadcast %cst_13 : f32 to vector<16x1xf32>
    %33 = arith.addf %29, %32 : vector<16x1xf32>
    %34 = math.rsqrt %33 : vector<16x1xf32>
    %35 = vector.broadcast %34 : vector<16x1xf32> to vector<16x32xf32>
    %36 = arith.mulf %31, %35 : vector<16x32xf32>
    %37 = vector.broadcast %8 : vector<1x32xf32> to vector<16x32xf32>
    %38 = arith.mulf %36, %37 : vector<16x32xf32>
    %39 = vector.broadcast %10 : vector<1x32xf32> to vector<16x32xf32>
    %40 = arith.addf %38, %39 : vector<16x32xf32>
    %c0_14 = arith.constant 0 : index
    %c0_15 = arith.constant 0 : index
    %c0_16 = arith.constant 0 : index
    %41 = vector.load %arg1[%c0_14, %c0_15, %c0_16] : memref<2x32x96xf32, #tpu.memory_space<vmem>>, vector<1x32x96xf32>
    %42 = vector.shape_cast %41 : vector<1x32x96xf32> to vector<32x96xf32>
    %cst_17 = arith.constant dense<0.000000e+00> : vector<16x96xf32>
    %43 = tpu.matmul %40, %42, %cst_17 {dimension_numbers = #tpu.dot_dimension_numbers<[1], [0], [0], [1], [0, 0, 1, 1], [], []>} : vector<16x32xf32>, vector<32x96xf32>, vector<16x96xf32> -> vector<16x96xf32>
    %44 = vector.extract_strided_slice %43 {offsets = [0, 0], sizes = [16, 16], strides = [1, 1]} : vector<16x96xf32> to vector<16x16xf32>
    %45 = vector.shape_cast %44 : vector<16x16xf32> to vector<2x8x16xf32>
    %46 = vector.extract_strided_slice %43 {offsets = [0, 16], sizes = [16, 16], strides = [1, 1]} : vector<16x96xf32> to vector<16x16xf32>
    %47 = vector.shape_cast %46 : vector<16x16xf32> to vector<2x8x16xf32>
    %48 = tpu.concatenate %45, %47 in 0 : vector<2x8x16xf32>, vector<2x8x16xf32> -> vector<4x8x16xf32>
    %49 = vector.extract_strided_slice %43 {offsets = [0, 32], sizes = [16, 16], strides = [1, 1]} : vector<16x96xf32> to vector<16x16xf32>
    %50 = vector.shape_cast %49 : vector<16x16xf32> to vector<2x8x16xf32>
    %51 = vector.extract_strided_slice %43 {offsets = [0, 48], sizes = [16, 16], strides = [1, 1]} : vector<16x96xf32> to vector<16x16xf32>
    %52 = vector.shape_cast %51 : vector<16x16xf32> to vector<2x8x16xf32>
    %53 = tpu.concatenate %50, %52 in 0 : vector<2x8x16xf32>, vector<2x8x16xf32> -> vector<4x8x16xf32>
    %54 = vector.extract_strided_slice %43 {offsets = [0, 64], sizes = [16, 16], strides = [1, 1]} : vector<16x96xf32> to vector<16x16xf32>
    %55 = vector.shape_cast %54 : vector<16x16xf32> to vector<2x8x16xf32>
    %56 = vector.extract_strided_slice %43 {offsets = [0, 80], sizes = [16, 16], strides = [1, 1]} : vector<16x96xf32> to vector<16x16xf32>
    %57 = vector.shape_cast %56 : vector<16x16xf32> to vector<2x8x16xf32>
    %58 = tpu.concatenate %55, %57 in 0 : vector<2x8x16xf32>, vector<2x8x16xf32> -> vector<4x8x16xf32>
    "tpu.trace_start"() <{level = 10 : i32, message = "bqd,bkd->bqk"}> : () -> ()
    %cst_18 = arith.constant dense<0.000000e+00> : vector<4x8x8xf32>
    %59 = tpu.matmul %48, %53, %cst_18 {dimension_numbers = #tpu.dot_dimension_numbers<[2], [2], [1], [1], [0, 0, 0, 1, 1, 1], [0], [0]>} : vector<4x8x16xf32>, vector<4x8x16xf32>, vector<4x8x8xf32> -> vector<4x8x8xf32>
    "tpu.trace_stop"() : () -> ()
    %cst_19 = arith.constant 2.500000e-01 : f32
    %60 = vector.broadcast %cst_19 : f32 to vector<4x8x8xf32>
    %61 = arith.mulf %59, %60 : vector<4x8x8xf32>
    %cst_20 = arith.constant dense<0xFF800000> : vector<4x8xf32>
    %62 = vector.multi_reduction <maximumf>, %61, %cst_20 [2] : vector<4x8x8xf32> to vector<4x8xf32>
    %63 = vector.shape_cast %62 : vector<4x8xf32> to vector<4x8x1xf32>
    %64 = vector.broadcast %63 : vector<4x8x1xf32> to vector<4x8x8xf32>
    %65 = arith.subf %61, %64 : vector<4x8x8xf32>
    %66 = math.exp %65 : vector<4x8x8xf32>
    %cst_21 = arith.constant dense<0.000000e+00> : vector<4x8xf32>
    %67 = vector.multi_reduction <add>, %66, %cst_21 [2] : vector<4x8x8xf32> to vector<4x8xf32>
    %68 = vector.shape_cast %67 : vector<4x8xf32> to vector<4x8x1xf32>
    %69 = tpu.reciprocal %68 : vector<4x8x1xf32> -> vector<4x8x1xf32>
    %70 = vector.broadcast %69 : vector<4x8x1xf32> to vector<4x8x8xf32>
    %71 = arith.mulf %66, %70 : vector<4x8x8xf32>
    "tpu.trace_start"() <{level = 10 : i32, message = "bqk,bkd->bqd"}> : () -> ()
    %cst_22 = arith.constant dense<0.000000e+00> : vector<4x8x16xf32>
    %72 = tpu.matmul %71, %58, %cst_22 {dimension_numbers = #tpu.dot_dimension_numbers<[2], [1], [1], [2], [0, 0, 0, 1, 1, 2], [0], [0]>} : vector<4x8x8xf32>, vector<4x8x16xf32>, vector<4x8x16xf32> -> vector<4x8x16xf32>
    "tpu.trace_stop"() : () -> ()
    %73 = vector.extract_strided_slice %72 {offsets = [0, 0, 0], sizes = [2, 8, 16], strides = [1, 1, 1]} : vector<4x8x16xf32> to vector<2x8x16xf32>
    %74 = vector.shape_cast %73 : vector<2x8x16xf32> to vector<16x16xf32>
    %75 = vector.extract_strided_slice %72 {offsets = [2, 0, 0], sizes = [2, 8, 16], strides = [1, 1, 1]} : vector<4x8x16xf32> to vector<2x8x16xf32>
    %76 = vector.shape_cast %75 : vector<2x8x16xf32> to vector<16x16xf32>
    %77 = tpu.concatenate %74, %76 in 1 : vector<16x16xf32>, vector<16x16xf32> -> vector<16x32xf32>
    %c0_23 = arith.constant 0 : index
    %c0_24 = arith.constant 0 : index
    %c0_25 = arith.constant 0 : index
    %78 = vector.load %arg2[%c0_23, %c0_24, %c0_25] : memref<2x32x32xf32, #tpu.memory_space<vmem>>, vector<1x32x32xf32>
    %79 = vector.shape_cast %78 : vector<1x32x32xf32> to vector<32x32xf32>
    %cst_26 = arith.constant dense<0.000000e+00> : vector<16x32xf32>
    %80 = tpu.matmul %77, %79, %cst_26 {dimension_numbers = #tpu.dot_dimension_numbers<[1], [0], [0], [1], [0, 0, 1, 1], [], []>} : vector<16x32xf32>, vector<32x32xf32>, vector<16x32xf32> -> vector<16x32xf32>
    %81 = arith.addf %6, %80 : vector<16x32xf32>
    %cst_27 = arith.constant dense<0.000000e+00> : vector<16xf32>
    %82 = vector.multi_reduction <add>, %81, %cst_27 [1] : vector<16x32xf32> to vector<16xf32>
    %83 = vector.shape_cast %82 : vector<16xf32> to vector<16x1xf32>
    %cst_28 = arith.constant 3.200000e+01 : f32
    %84 = vector.broadcast %cst_28 : f32 to vector<16x1xf32>
    %85 = arith.divf %83, %84 : vector<16x1xf32>
    %86 = vector.broadcast %85 : vector<16x1xf32> to vector<16x32xf32>
    %87 = arith.subf %81, %86 : vector<16x32xf32>
    %88 = arith.mulf %87, %87 : vector<16x32xf32>
    %cst_29 = arith.constant dense<0.000000e+00> : vector<16xf32>
    %89 = vector.multi_reduction <add>, %88, %cst_29 [1] : vector<16x32xf32> to vector<16xf32>
    %90 = vector.shape_cast %89 : vector<16xf32> to vector<16x1xf32>
    %cst_30 = arith.constant 3.200000e+01 : f32
    %91 = vector.broadcast %cst_30 : f32 to vector<16x1xf32>
    %92 = arith.divf %90, %91 : vector<16x1xf32>
    %93 = vector.broadcast %85 : vector<16x1xf32> to vector<16x32xf32>
    %94 = arith.subf %81, %93 : vector<16x32xf32>
    %cst_31 = arith.constant 9.99999974E-6 : f32
    %95 = vector.broadcast %cst_31 : f32 to vector<16x1xf32>
    %96 = arith.addf %92, %95 : vector<16x1xf32>
    %97 = math.rsqrt %96 : vector<16x1xf32>
    %98 = vector.broadcast %97 : vector<16x1xf32> to vector<16x32xf32>
    %99 = arith.mulf %94, %98 : vector<16x32xf32>
    %100 = vector.broadcast %12 : vector<1x32xf32> to vector<16x32xf32>
    %101 = arith.mulf %99, %100 : vector<16x32xf32>
    %102 = vector.broadcast %14 : vector<1x32xf32> to vector<16x32xf32>
    %103 = arith.addf %101, %102 : vector<16x32xf32>
    %c0_32 = arith.constant 0 : index
    %c0_33 = arith.constant 0 : index
    %c0_34 = arith.constant 0 : index
    %104 = vector.load %arg3[%c0_32, %c0_33, %c0_34] : memref<2x32x64xf32, #tpu.memory_space<vmem>>, vector<1x32x64xf32>
    %105 = vector.shape_cast %104 : vector<1x32x64xf32> to vector<32x64xf32>
    %cst_35 = arith.constant dense<0.000000e+00> : vector<16x64xf32>
    %106 = tpu.matmul %103, %105, %cst_35 {dimension_numbers = #tpu.dot_dimension_numbers<[1], [0], [0], [1], [0, 0, 1, 1], [], []>} : vector<16x32xf32>, vector<32x64xf32>, vector<16x64xf32> -> vector<16x64xf32>
    %107 = vector.broadcast %16 : vector<1x64xf32> to vector<16x64xf32>
    %108 = arith.addf %106, %107 : vector<16x64xf32>
    %cst_36 = arith.constant 5.000000e-01 : f32
    %109 = vector.broadcast %cst_36 : f32 to vector<16x64xf32>
    %110 = arith.mulf %109, %108 : vector<16x64xf32>
    %cst_37 = arith.constant 2.000000e+00 : f32
    %111 = math.sqrt %cst_37 : f32
    %112 = vector.broadcast %111 : f32 to vector<16x64xf32>
    %113 = arith.divf %108, %112 : vector<16x64xf32>
    %114 = math.erf %113 : vector<16x64xf32>
    %cst_38 = arith.constant 1.000000e+00 : f32
    %115 = vector.broadcast %cst_38 : f32 to vector<16x64xf32>
    %116 = arith.addf %115, %114 : vector<16x64xf32>
    %117 = arith.mulf %110, %116 : vector<16x64xf32>
    %c0_39 = arith.constant 0 : index
    %c0_40 = arith.constant 0 : index
    %c0_41 = arith.constant 0 : index
    %118 = vector.load %arg4[%c0_39, %c0_40, %c0_41] : memref<2x64x32xf32, #tpu.memory_space<vmem>>, vector<1x64x32xf32>
    %119 = vector.shape_cast %118 : vector<1x64x32xf32> to vector<64x32xf32>
    %cst_42 = arith.constant dense<0.000000e+00> : vector<16x32xf32>
    %120 = tpu.matmul %117, %119, %cst_42 {dimension_numbers = #tpu.dot_dimension_numbers<[1], [0], [0], [1], [0, 0, 1, 1], [], []>} : vector<16x64xf32>, vector<64x32xf32>, vector<16x32xf32> -> vector<16x32xf32>
    %121 = arith.addf %81, %120 : vector<16x32xf32>
    %122 = vector.broadcast %18 : vector<1x32xf32> to vector<16x32xf32>
    %123 = arith.addf %121, %122 : vector<16x32xf32>
    %c14 = arith.constant 14 : index
    %c0_43 = arith.constant 0 : index
    %124 = vector.load %arg5[%c14, %c0_43] : memref<24x256xf32, #tpu.memory_space<vmem>>, vector<1x256xf32>
    %125 = vector.extract_strided_slice %124 {offsets = [0, 0], sizes = [1, 32], strides = [1, 1]} : vector<1x256xf32> to vector<1x32xf32>
    %c15 = arith.constant 15 : index
    %c0_44 = arith.constant 0 : index
    %126 = vector.load %arg5[%c15, %c0_44] : memref<24x256xf32, #tpu.memory_space<vmem>>, vector<1x256xf32>
    %127 = vector.extract_strided_slice %126 {offsets = [0, 0], sizes = [1, 32], strides = [1, 1]} : vector<1x256xf32> to vector<1x32xf32>
    %c16 = arith.constant 16 : index
    %c0_45 = arith.constant 0 : index
    %128 = vector.load %arg5[%c16, %c0_45] : memref<24x256xf32, #tpu.memory_space<vmem>>, vector<1x256xf32>
    %129 = vector.extract_strided_slice %128 {offsets = [0, 0], sizes = [1, 32], strides = [1, 1]} : vector<1x256xf32> to vector<1x32xf32>
    %c17 = arith.constant 17 : index
    %c0_46 = arith.constant 0 : index
    %130 = vector.load %arg5[%c17, %c0_46] : memref<24x256xf32, #tpu.memory_space<vmem>>, vector<1x256xf32>
    %131 = vector.extract_strided_slice %130 {offsets = [0, 0], sizes = [1, 32], strides = [1, 1]} : vector<1x256xf32> to vector<1x32xf32>
    %c18 = arith.constant 18 : index
    %c0_47 = arith.constant 0 : index
    %132 = vector.load %arg5[%c18, %c0_47] : memref<24x256xf32, #tpu.memory_space<vmem>>, vector<1x256xf32>
    %133 = vector.extract_strided_slice %132 {offsets = [0, 0], sizes = [1, 64], strides = [1, 1]} : vector<1x256xf32> to vector<1x64xf32>
    %c19 = arith.constant 19 : index
    %c0_48 = arith.constant 0 : index
    %134 = vector.load %arg5[%c19, %c0_48] : memref<24x256xf32, #tpu.memory_space<vmem>>, vector<1x256xf32>
    %135 = vector.extract_strided_slice %134 {offsets = [0, 0], sizes = [1, 32], strides = [1, 1]} : vector<1x256xf32> to vector<1x32xf32>
    %cst_49 = arith.constant dense<0.000000e+00> : vector<16xf32>
    %136 = vector.multi_reduction <add>, %123, %cst_49 [1] : vector<16x32xf32> to vector<16xf32>
    %137 = vector.shape_cast %136 : vector<16xf32> to vector<16x1xf32>
    %cst_50 = arith.constant 3.200000e+01 : f32
    %138 = vector.broadcast %cst_50 : f32 to vector<16x1xf32>
    %139 = arith.divf %137, %138 : vector<16x1xf32>
    %140 = vector.broadcast %139 : vector<16x1xf32> to vector<16x32xf32>
    %141 = arith.subf %123, %140 : vector<16x32xf32>
    %142 = arith.mulf %141, %141 : vector<16x32xf32>
    %cst_51 = arith.constant dense<0.000000e+00> : vector<16xf32>
    %143 = vector.multi_reduction <add>, %142, %cst_51 [1] : vector<16x32xf32> to vector<16xf32>
    %144 = vector.shape_cast %143 : vector<16xf32> to vector<16x1xf32>
    %cst_52 = arith.constant 3.200000e+01 : f32
    %145 = vector.broadcast %cst_52 : f32 to vector<16x1xf32>
    %146 = arith.divf %144, %145 : vector<16x1xf32>
    %147 = vector.broadcast %139 : vector<16x1xf32> to vector<16x32xf32>
    %148 = arith.subf %123, %147 : vector<16x32xf32>
    %cst_53 = arith.constant 9.99999974E-6 : f32
    %149 = vector.broadcast %cst_53 : f32 to vector<16x1xf32>
    %150 = arith.addf %146, %149 : vector<16x1xf32>
    %151 = math.rsqrt %150 : vector<16x1xf32>
    %152 = vector.broadcast %151 : vector<16x1xf32> to vector<16x32xf32>
    %153 = arith.mulf %148, %152 : vector<16x32xf32>
    %154 = vector.broadcast %125 : vector<1x32xf32> to vector<16x32xf32>
    %155 = arith.mulf %153, %154 : vector<16x32xf32>
    %156 = vector.broadcast %127 : vector<1x32xf32> to vector<16x32xf32>
    %157 = arith.addf %155, %156 : vector<16x32xf32>
    %c1 = arith.constant 1 : index
    %c0_54 = arith.constant 0 : index
    %c0_55 = arith.constant 0 : index
    %158 = vector.load %arg1[%c1, %c0_54, %c0_55] : memref<2x32x96xf32, #tpu.memory_space<vmem>>, vector<1x32x96xf32>
    %159 = vector.shape_cast %158 : vector<1x32x96xf32> to vector<32x96xf32>
    %cst_56 = arith.constant dense<0.000000e+00> : vector<16x96xf32>
    %160 = tpu.matmul %157, %159, %cst_56 {dimension_numbers = #tpu.dot_dimension_numbers<[1], [0], [0], [1], [0, 0, 1, 1], [], []>} : vector<16x32xf32>, vector<32x96xf32>, vector<16x96xf32> -> vector<16x96xf32>
    %161 = vector.extract_strided_slice %160 {offsets = [0, 0], sizes = [16, 16], strides = [1, 1]} : vector<16x96xf32> to vector<16x16xf32>
    %162 = vector.shape_cast %161 : vector<16x16xf32> to vector<2x8x16xf32>
    %163 = vector.extract_strided_slice %160 {offsets = [0, 16], sizes = [16, 16], strides = [1, 1]} : vector<16x96xf32> to vector<16x16xf32>
    %164 = vector.shape_cast %163 : vector<16x16xf32> to vector<2x8x16xf32>
    %165 = tpu.concatenate %162, %164 in 0 : vector<2x8x16xf32>, vector<2x8x16xf32> -> vector<4x8x16xf32>
    %166 = vector.extract_strided_slice %160 {offsets = [0, 32], sizes = [16, 16], strides = [1, 1]} : vector<16x96xf32> to vector<16x16xf32>
    %167 = vector.shape_cast %166 : vector<16x16xf32> to vector<2x8x16xf32>
    %168 = vector.extract_strided_slice %160 {offsets = [0, 48], sizes = [16, 16], strides = [1, 1]} : vector<16x96xf32> to vector<16x16xf32>
    %169 = vector.shape_cast %168 : vector<16x16xf32> to vector<2x8x16xf32>
    %170 = tpu.concatenate %167, %169 in 0 : vector<2x8x16xf32>, vector<2x8x16xf32> -> vector<4x8x16xf32>
    %171 = vector.extract_strided_slice %160 {offsets = [0, 64], sizes = [16, 16], strides = [1, 1]} : vector<16x96xf32> to vector<16x16xf32>
    %172 = vector.shape_cast %171 : vector<16x16xf32> to vector<2x8x16xf32>
    %173 = vector.extract_strided_slice %160 {offsets = [0, 80], sizes = [16, 16], strides = [1, 1]} : vector<16x96xf32> to vector<16x16xf32>
    %174 = vector.shape_cast %173 : vector<16x16xf32> to vector<2x8x16xf32>
    %175 = tpu.concatenate %172, %174 in 0 : vector<2x8x16xf32>, vector<2x8x16xf32> -> vector<4x8x16xf32>
    "tpu.trace_start"() <{level = 10 : i32, message = "bqd,bkd->bqk"}> : () -> ()
    %cst_57 = arith.constant dense<0.000000e+00> : vector<4x8x8xf32>
    %176 = tpu.matmul %165, %170, %cst_57 {dimension_numbers = #tpu.dot_dimension_numbers<[2], [2], [1], [1], [0, 0, 0, 1, 1, 1], [0], [0]>} : vector<4x8x16xf32>, vector<4x8x16xf32>, vector<4x8x8xf32> -> vector<4x8x8xf32>
    "tpu.trace_stop"() : () -> ()
    %cst_58 = arith.constant 2.500000e-01 : f32
    %177 = vector.broadcast %cst_58 : f32 to vector<4x8x8xf32>
    %178 = arith.mulf %176, %177 : vector<4x8x8xf32>
    %cst_59 = arith.constant dense<0xFF800000> : vector<4x8xf32>
    %179 = vector.multi_reduction <maximumf>, %178, %cst_59 [2] : vector<4x8x8xf32> to vector<4x8xf32>
    %180 = vector.shape_cast %179 : vector<4x8xf32> to vector<4x8x1xf32>
    %181 = vector.broadcast %180 : vector<4x8x1xf32> to vector<4x8x8xf32>
    %182 = arith.subf %178, %181 : vector<4x8x8xf32>
    %183 = math.exp %182 : vector<4x8x8xf32>
    %cst_60 = arith.constant dense<0.000000e+00> : vector<4x8xf32>
    %184 = vector.multi_reduction <add>, %183, %cst_60 [2] : vector<4x8x8xf32> to vector<4x8xf32>
    %185 = vector.shape_cast %184 : vector<4x8xf32> to vector<4x8x1xf32>
    %186 = tpu.reciprocal %185 : vector<4x8x1xf32> -> vector<4x8x1xf32>
    %187 = vector.broadcast %186 : vector<4x8x1xf32> to vector<4x8x8xf32>
    %188 = arith.mulf %183, %187 : vector<4x8x8xf32>
    "tpu.trace_start"() <{level = 10 : i32, message = "bqk,bkd->bqd"}> : () -> ()
    %cst_61 = arith.constant dense<0.000000e+00> : vector<4x8x16xf32>
    %189 = tpu.matmul %188, %175, %cst_61 {dimension_numbers = #tpu.dot_dimension_numbers<[2], [1], [1], [2], [0, 0, 0, 1, 1, 2], [0], [0]>} : vector<4x8x8xf32>, vector<4x8x16xf32>, vector<4x8x16xf32> -> vector<4x8x16xf32>
    "tpu.trace_stop"() : () -> ()
    %190 = vector.extract_strided_slice %189 {offsets = [0, 0, 0], sizes = [2, 8, 16], strides = [1, 1, 1]} : vector<4x8x16xf32> to vector<2x8x16xf32>
    %191 = vector.shape_cast %190 : vector<2x8x16xf32> to vector<16x16xf32>
    %192 = vector.extract_strided_slice %189 {offsets = [2, 0, 0], sizes = [2, 8, 16], strides = [1, 1, 1]} : vector<4x8x16xf32> to vector<2x8x16xf32>
    %193 = vector.shape_cast %192 : vector<2x8x16xf32> to vector<16x16xf32>
    %194 = tpu.concatenate %191, %193 in 1 : vector<16x16xf32>, vector<16x16xf32> -> vector<16x32xf32>
    %c1_62 = arith.constant 1 : index
    %c0_63 = arith.constant 0 : index
    %c0_64 = arith.constant 0 : index
    %195 = vector.load %arg2[%c1_62, %c0_63, %c0_64] : memref<2x32x32xf32, #tpu.memory_space<vmem>>, vector<1x32x32xf32>
    %196 = vector.shape_cast %195 : vector<1x32x32xf32> to vector<32x32xf32>
    %cst_65 = arith.constant dense<0.000000e+00> : vector<16x32xf32>
    %197 = tpu.matmul %194, %196, %cst_65 {dimension_numbers = #tpu.dot_dimension_numbers<[1], [0], [0], [1], [0, 0, 1, 1], [], []>} : vector<16x32xf32>, vector<32x32xf32>, vector<16x32xf32> -> vector<16x32xf32>
    %198 = arith.addf %123, %197 : vector<16x32xf32>
    %cst_66 = arith.constant dense<0.000000e+00> : vector<16xf32>
    %199 = vector.multi_reduction <add>, %198, %cst_66 [1] : vector<16x32xf32> to vector<16xf32>
    %200 = vector.shape_cast %199 : vector<16xf32> to vector<16x1xf32>
    %cst_67 = arith.constant 3.200000e+01 : f32
    %201 = vector.broadcast %cst_67 : f32 to vector<16x1xf32>
    %202 = arith.divf %200, %201 : vector<16x1xf32>
    %203 = vector.broadcast %202 : vector<16x1xf32> to vector<16x32xf32>
    %204 = arith.subf %198, %203 : vector<16x32xf32>
    %205 = arith.mulf %204, %204 : vector<16x32xf32>
    %cst_68 = arith.constant dense<0.000000e+00> : vector<16xf32>
    %206 = vector.multi_reduction <add>, %205, %cst_68 [1] : vector<16x32xf32> to vector<16xf32>
    %207 = vector.shape_cast %206 : vector<16xf32> to vector<16x1xf32>
    %cst_69 = arith.constant 3.200000e+01 : f32
    %208 = vector.broadcast %cst_69 : f32 to vector<16x1xf32>
    %209 = arith.divf %207, %208 : vector<16x1xf32>
    %210 = vector.broadcast %202 : vector<16x1xf32> to vector<16x32xf32>
    %211 = arith.subf %198, %210 : vector<16x32xf32>
    %cst_70 = arith.constant 9.99999974E-6 : f32
    %212 = vector.broadcast %cst_70 : f32 to vector<16x1xf32>
    %213 = arith.addf %209, %212 : vector<16x1xf32>
    %214 = math.rsqrt %213 : vector<16x1xf32>
    %215 = vector.broadcast %214 : vector<16x1xf32> to vector<16x32xf32>
    %216 = arith.mulf %211, %215 : vector<16x32xf32>
    %217 = vector.broadcast %129 : vector<1x32xf32> to vector<16x32xf32>
    %218 = arith.mulf %216, %217 : vector<16x32xf32>
    %219 = vector.broadcast %131 : vector<1x32xf32> to vector<16x32xf32>
    %220 = arith.addf %218, %219 : vector<16x32xf32>
    %c1_71 = arith.constant 1 : index
    %c0_72 = arith.constant 0 : index
    %c0_73 = arith.constant 0 : index
    %221 = vector.load %arg3[%c1_71, %c0_72, %c0_73] : memref<2x32x64xf32, #tpu.memory_space<vmem>>, vector<1x32x64xf32>
    %222 = vector.shape_cast %221 : vector<1x32x64xf32> to vector<32x64xf32>
    %cst_74 = arith.constant dense<0.000000e+00> : vector<16x64xf32>
    %223 = tpu.matmul %220, %222, %cst_74 {dimension_numbers = #tpu.dot_dimension_numbers<[1], [0], [0], [1], [0, 0, 1, 1], [], []>} : vector<16x32xf32>, vector<32x64xf32>, vector<16x64xf32> -> vector<16x64xf32>
    %224 = vector.broadcast %133 : vector<1x64xf32> to vector<16x64xf32>
    %225 = arith.addf %223, %224 : vector<16x64xf32>
    %cst_75 = arith.constant 5.000000e-01 : f32
    %226 = vector.broadcast %cst_75 : f32 to vector<16x64xf32>
    %227 = arith.mulf %226, %225 : vector<16x64xf32>
    %cst_76 = arith.constant 2.000000e+00 : f32
    %228 = math.sqrt %cst_76 : f32
    %229 = vector.broadcast %228 : f32 to vector<16x64xf32>
    %230 = arith.divf %225, %229 : vector<16x64xf32>
    %231 = math.erf %230 : vector<16x64xf32>
    %cst_77 = arith.constant 1.000000e+00 : f32
    %232 = vector.broadcast %cst_77 : f32 to vector<16x64xf32>
    %233 = arith.addf %232, %231 : vector<16x64xf32>
    %234 = arith.mulf %227, %233 : vector<16x64xf32>
    %c1_78 = arith.constant 1 : index
    %c0_79 = arith.constant 0 : index
    %c0_80 = arith.constant 0 : index
    %235 = vector.load %arg4[%c1_78, %c0_79, %c0_80] : memref<2x64x32xf32, #tpu.memory_space<vmem>>, vector<1x64x32xf32>
    %236 = vector.shape_cast %235 : vector<1x64x32xf32> to vector<64x32xf32>
    %cst_81 = arith.constant dense<0.000000e+00> : vector<16x32xf32>
    %237 = tpu.matmul %234, %236, %cst_81 {dimension_numbers = #tpu.dot_dimension_numbers<[1], [0], [0], [1], [0, 0, 1, 1], [], []>} : vector<16x64xf32>, vector<64x32xf32>, vector<16x32xf32> -> vector<16x32xf32>
    %238 = arith.addf %198, %237 : vector<16x32xf32>
    %239 = vector.broadcast %135 : vector<1x32xf32> to vector<16x32xf32>
    %240 = arith.addf %238, %239 : vector<16x32xf32>
    %c20 = arith.constant 20 : index
    %c0_82 = arith.constant 0 : index
    %241 = vector.load %arg5[%c20, %c0_82] : memref<24x256xf32, #tpu.memory_space<vmem>>, vector<1x256xf32>
    %242 = vector.extract_strided_slice %241 {offsets = [0, 0], sizes = [1, 32], strides = [1, 1]} : vector<1x256xf32> to vector<1x32xf32>
    %c21 = arith.constant 21 : index
    %c0_83 = arith.constant 0 : index
    %243 = vector.load %arg5[%c21, %c0_83] : memref<24x256xf32, #tpu.memory_space<vmem>>, vector<1x256xf32>
    %244 = vector.extract_strided_slice %243 {offsets = [0, 0], sizes = [1, 32], strides = [1, 1]} : vector<1x256xf32> to vector<1x32xf32>
    %cst_84 = arith.constant dense<0.000000e+00> : vector<16xf32>
    %245 = vector.multi_reduction <add>, %240, %cst_84 [1] : vector<16x32xf32> to vector<16xf32>
    %246 = vector.shape_cast %245 : vector<16xf32> to vector<16x1xf32>
    %cst_85 = arith.constant 3.200000e+01 : f32
    %247 = vector.broadcast %cst_85 : f32 to vector<16x1xf32>
    %248 = arith.divf %246, %247 : vector<16x1xf32>
    %249 = vector.broadcast %248 : vector<16x1xf32> to vector<16x32xf32>
    %250 = arith.subf %240, %249 : vector<16x32xf32>
    %251 = arith.mulf %250, %250 : vector<16x32xf32>
    %cst_86 = arith.constant dense<0.000000e+00> : vector<16xf32>
    %252 = vector.multi_reduction <add>, %251, %cst_86 [1] : vector<16x32xf32> to vector<16xf32>
    %253 = vector.shape_cast %252 : vector<16xf32> to vector<16x1xf32>
    %cst_87 = arith.constant 3.200000e+01 : f32
    %254 = vector.broadcast %cst_87 : f32 to vector<16x1xf32>
    %255 = arith.divf %253, %254 : vector<16x1xf32>
    %256 = vector.broadcast %248 : vector<16x1xf32> to vector<16x32xf32>
    %257 = arith.subf %240, %256 : vector<16x32xf32>
    %cst_88 = arith.constant 9.99999974E-6 : f32
    %258 = vector.broadcast %cst_88 : f32 to vector<16x1xf32>
    %259 = arith.addf %255, %258 : vector<16x1xf32>
    %260 = math.rsqrt %259 : vector<16x1xf32>
    %261 = vector.broadcast %260 : vector<16x1xf32> to vector<16x32xf32>
    %262 = arith.mulf %257, %261 : vector<16x32xf32>
    %263 = vector.broadcast %242 : vector<1x32xf32> to vector<16x32xf32>
    %264 = arith.mulf %262, %263 : vector<16x32xf32>
    %265 = vector.broadcast %244 : vector<1x32xf32> to vector<16x32xf32>
    %266 = arith.addf %264, %265 : vector<16x32xf32>
    %267 = vector.extract_strided_slice %266 {offsets = [0, 0], sizes = [1, 32], strides = [1, 1]} : vector<16x32xf32> to vector<1x32xf32>
    %268 = vector.extract_strided_slice %266 {offsets = [1, 0], sizes = [1, 32], strides = [1, 1]} : vector<16x32xf32> to vector<1x32xf32>
    %269 = vector.extract_strided_slice %266 {offsets = [2, 0], sizes = [1, 32], strides = [1, 1]} : vector<16x32xf32> to vector<1x32xf32>
    %270 = vector.extract_strided_slice %266 {offsets = [3, 0], sizes = [1, 32], strides = [1, 1]} : vector<16x32xf32> to vector<1x32xf32>
    %271 = vector.extract_strided_slice %266 {offsets = [4, 0], sizes = [1, 32], strides = [1, 1]} : vector<16x32xf32> to vector<1x32xf32>
    %272 = vector.extract_strided_slice %266 {offsets = [5, 0], sizes = [1, 32], strides = [1, 1]} : vector<16x32xf32> to vector<1x32xf32>
    %273 = vector.extract_strided_slice %266 {offsets = [6, 0], sizes = [1, 32], strides = [1, 1]} : vector<16x32xf32> to vector<1x32xf32>
    %274 = vector.extract_strided_slice %266 {offsets = [7, 0], sizes = [1, 32], strides = [1, 1]} : vector<16x32xf32> to vector<1x32xf32>
    %275 = tpu.concatenate %267, %268, %269, %270, %271, %272, %273, %274 in 1 : vector<1x32xf32>, vector<1x32xf32>, vector<1x32xf32>, vector<1x32xf32>, vector<1x32xf32>, vector<1x32xf32>, vector<1x32xf32>, vector<1x32xf32> -> vector<1x256xf32>
    %276 = vector.extract_strided_slice %266 {offsets = [8, 0], sizes = [1, 32], strides = [1, 1]} : vector<16x32xf32> to vector<1x32xf32>
    %277 = vector.extract_strided_slice %266 {offsets = [9, 0], sizes = [1, 32], strides = [1, 1]} : vector<16x32xf32> to vector<1x32xf32>
    %278 = vector.extract_strided_slice %266 {offsets = [10, 0], sizes = [1, 32], strides = [1, 1]} : vector<16x32xf32> to vector<1x32xf32>
    %279 = vector.extract_strided_slice %266 {offsets = [11, 0], sizes = [1, 32], strides = [1, 1]} : vector<16x32xf32> to vector<1x32xf32>
    %280 = vector.extract_strided_slice %266 {offsets = [12, 0], sizes = [1, 32], strides = [1, 1]} : vector<16x32xf32> to vector<1x32xf32>
    %281 = vector.extract_strided_slice %266 {offsets = [13, 0], sizes = [1, 32], strides = [1, 1]} : vector<16x32xf32> to vector<1x32xf32>
    %282 = vector.extract_strided_slice %266 {offsets = [14, 0], sizes = [1, 32], strides = [1, 1]} : vector<16x32xf32> to vector<1x32xf32>
    %283 = vector.extract_strided_slice %266 {offsets = [15, 0], sizes = [1, 32], strides = [1, 1]} : vector<16x32xf32> to vector<1x32xf32>
    %284 = tpu.concatenate %276, %277, %278, %279, %280, %281, %282, %283 in 1 : vector<1x32xf32>, vector<1x32xf32>, vector<1x32xf32>, vector<1x32xf32>, vector<1x32xf32>, vector<1x32xf32>, vector<1x32xf32>, vector<1x32xf32> -> vector<1x256xf32>
    %285 = tpu.concatenate %275, %284 in 0 : vector<1x256xf32>, vector<1x256xf32> -> vector<2x256xf32>
    %c22 = arith.constant 22 : index
    %c0_89 = arith.constant 0 : index
    %286 = vector.load %arg5[%c22, %c0_89] : memref<24x256xf32, #tpu.memory_space<vmem>>, vector<1x256xf32>
    %c23 = arith.constant 23 : index
    %c0_90 = arith.constant 0 : index
    %287 = vector.load %arg5[%c23, %c0_90] : memref<24x256xf32, #tpu.memory_space<vmem>>, vector<1x256xf32>
    %cst_91 = arith.constant dense<0.000000e+00> : vector<256xf32>
    %288 = vector.multi_reduction <add>, %285, %cst_91 [0] : vector<2x256xf32> to vector<256xf32>
    %289 = vector.shape_cast %288 : vector<256xf32> to vector<1x256xf32>
    %cst_92 = arith.constant 2.000000e+00 : f32
    %290 = vector.broadcast %cst_92 : f32 to vector<1x256xf32>
    %291 = arith.divf %289, %290 : vector<1x256xf32>
    %292 = vector.broadcast %291 : vector<1x256xf32> to vector<2x256xf32>
    %293 = arith.subf %285, %292 : vector<2x256xf32>
    %294 = arith.mulf %293, %293 : vector<2x256xf32>
    %cst_93 = arith.constant dense<0.000000e+00> : vector<256xf32>
    %295 = vector.multi_reduction <add>, %294, %cst_93 [0] : vector<2x256xf32> to vector<256xf32>
    %296 = vector.shape_cast %295 : vector<256xf32> to vector<1x256xf32>
    %cst_94 = arith.constant 2.000000e+00 : f32
    %297 = vector.broadcast %cst_94 : f32 to vector<1x256xf32>
    %298 = arith.divf %296, %297 : vector<1x256xf32>
    %299 = vector.broadcast %291 : vector<1x256xf32> to vector<2x256xf32>
    %300 = arith.subf %285, %299 : vector<2x256xf32>
    %cst_95 = arith.constant 9.99999974E-6 : f32
    %301 = vector.broadcast %cst_95 : f32 to vector<1x256xf32>
    %302 = arith.addf %298, %301 : vector<1x256xf32>
    %303 = math.rsqrt %302 : vector<1x256xf32>
    %304 = vector.broadcast %303 : vector<1x256xf32> to vector<2x256xf32>
    %305 = arith.mulf %300, %304 : vector<2x256xf32>
    %306 = vector.broadcast %286 : vector<1x256xf32> to vector<2x256xf32>
    %307 = arith.mulf %305, %306 : vector<2x256xf32>
    %308 = vector.broadcast %287 : vector<1x256xf32> to vector<2x256xf32>
    %309 = arith.addf %307, %308 : vector<2x256xf32>
    %c0_96 = arith.constant 0 : index
    %c0_97 = arith.constant 0 : index
    %310 = vector.load %arg7[%c0_96, %c0_97] : memref<2x256xf32, #tpu.memory_space<vmem>>, vector<2x256xf32>
    tpu.vector_store %arg7[%c0_96, %c0_97], %309 {strides = array<i32>} : memref<2x256xf32, #tpu.memory_space<vmem>>, vector<2x256xf32>,
    %c0_98 = arith.constant 0 : index
    %c0_99 = arith.constant 0 : index
    %311 = vector.load %arg6[%c0_98, %c0_99] : memref<256x128xf32, #tpu.memory_space<vmem>>, vector<256x128xf32>
    %cst_100 = arith.constant dense<0.000000e+00> : vector<2x128xf32>
    %312 = tpu.matmul %309, %311, %cst_100 {dimension_numbers = #tpu.dot_dimension_numbers<[1], [0], [0], [1], [0, 0, 1, 1], [], []>} : vector<2x256xf32>, vector<256x128xf32>, vector<2x128xf32> -> vector<2x128xf32>
    %c0_101 = arith.constant 0 : index
    %c0_102 = arith.constant 0 : index
    %313 = vector.load %arg8[%c0_101, %c0_102] : memref<2x128xf32, #tpu.memory_space<vmem>>, vector<2x128xf32>
    tpu.vector_store %arg8[%c0_101, %c0_102], %312 {strides = array<i32>} : memref<2x128xf32, #tpu.memory_space<vmem>>, vector<2x128xf32>,
    return
  }
}

</mosaic_0001>

<bundles_post_ra>
// kernel: simple_vit_forward.1
= control target key start
LH: loop header
LB: loop body
LE: loop exit
PB: predicated region body
PF: predicated region fallthrough
CT: control target
= control target key end

     0   :  { %14 = vsyncpa [#allocation3], 0  ;;  %vm47_vm0 = vcmask 261120   ;;  %s3802_s0 = inlined_call_operand.vmem [shape: f32[2,8,32], index: 0, kind: input, shape index: {}]   ;;  %s3803_s1 = inlined_call_operand.vmem [shape: f32[2,32,96], index: 1, kind: input, shape index: {}]   ;;  %s3804_s2 = inlined_call_operand.vmem [shape: f32[2,32,32], index: 2, kind: input, shape index: {}]   ;;  %s3805_s3 = inlined_call_operand.vmem [shape: f32[2,32,64], index: 3, kind: input, shape index: {}]   ;;  %s3806_s4 = inlined_call_operand.vmem [shape: f32[2,64,32], index: 4, kind: input, shape index: {}]   ;;  %s3807_s5 = inlined_call_operand.vmem [shape: f32[24,256], index: 5, kind: input, shape index: {}]   ;;  %s3808_s6 = inlined_call_operand.vmem [shape: f32[256,128], index: 6, kind: input, shape index: {}]   ;;  %s3809_s7 = inlined_call_operand.hbm [shape: f32[2,256], index: 7, kind: output, shape index: {0}]   ;;  %s3810_s8 = inlined_call_operand.hbm [shape: f32[2,128], index: 8, kind: output, shape index: {1}]  }
   0x1   :  { %v30_v0 = vld [vmem:[%s3807_s5] sm:$0xff]  ;;  %v32_v2 = vld [vmem:[%s3802_s0 + $0x8] sm:$0xff] }
   0x2   :  { %v31_v1 = vld [vmem:[%s3802_s0] sm:$0xff]  ;;  %v3230_v4 = vadd.f32 %v32_v2, %v30_v0 }
   0x3   :  { %v3228_v3 = vadd.f32 %v31_v1, %v30_v0 }
   0x4   :  { %15 = vsyncpa [#allocation5], 0  ;;  %v51_v6 = vsel %vm47_vm0, %v3230_v4, 0.0  ;;  %v94_v17 = vld [vmem:[%s3803_s1 + $0x18] sm:$0xff]  ;;  %v93_v18 = vld [vmem:[%s3803_s1 + $0x10] sm:$0xff]  ;;  %v76_v26 = vlaneseq  ;;  %v3165_v42 = vmov 0.0  }
   0x5   :  { %v48_v5 = vsel %vm47_vm0, %v3228_v3, 0.0  ;;  %2864 = vmatprep.subr.mxu0 %v94_v17  ;;  %v92_v19 = vld [vmem:[%s3803_s1 + $0x8] sm:$0xff]  ;;  %v91_v20 = vld [vmem:[%s3803_s1] sm:$0xff]  ;;  %v2664_v30 = vld [vmem:[%s3807_s5 + $0x10] ss:$8 sm:$0x3]  ;;  %2875 = vmatprep.subr.mxu1 %v3165_v42 }
   0x6   :  { %49 = vadd.xlane.f32.xlu0 %v48_v5  ;;  %2865 = vmatpush3.msra.mxu0 %v94_v17  ;;  %v3252_v28 = vshrl.u32 %v76_v26, 7  ;;  %v2665_v31 = vld [vmem:[%s3807_s5 + $0x11] ss:$8 sm:$0x3]  ;;  %vm3166_vm1 = vmmov 0   ;;  %s3167_s22 = smov 112  }
   0x7   :  { %2866 = vmatprep.subr.mxu0 %v93_v18  ;;  %2877 = vmatprep.mubr.msk.f32.mxu1 %vm3166_vm1, %v3165_v42  ;;  %s3168_s23 = smov 96   ;;  %vm184_vm2 = vcmask 130048   ;;  %vm491_vm3 = vcmask 64512   ;;  %s3169_s24 = smov 64   ;;  %vm1089_vm4 = vcmask 523264   ;;  %vm2400_vm5 = vcmask 785408  }
   0x8   :  { %2867 = vmatpush3.msra.mxu0 %v93_v18  ;;  %v3255_v29 = vsub.s32 0, %v3252_v28  ;;  %s3170_s0 = smov 16   ;;  %s3171_s13 = smov 32   ;;  %vm2444_vm6 = vcmask 1040384   ;;  %vm2451_vm7 = vcmask 1041408  }
   0x9   :  { %2868 = vmatprep.subr.mxu0 %v92_v19  ;;  %s3172_s25 = smov [#allocation2]  }
   0xa   :  { %52 = vadd.xlane.f32.xlu0 %v51_v6  ;;  %2869 = vmatpush3.msra.mxu0 %v92_v19  ;;  %v79_v32 = vrot.slane %v2664_v30, %v3255_v29  ;;  %v87_v35 = vrot.slane %v2665_v31, %v3255_v29 }
   0xb   :  { %2870 = vmatprep.subr.mxu0 %v91_v20 }
   0xc   :  { %2871 = vmatpush3.msra.mxu0 %v91_v20 }
   0xd   :  { %2885 = vmatprep.subr.mxu0 %v3165_v42 }
  0x8f   :  { %v50_v7 = vpop.xlane.xlu0 %49 }
  0x90   :  { %v55_v8 = vmul.f32 0.03125, %v50_v7 }
  0x92   :  { %v57_v9 = vsub.f32 %v3228_v3, %v55_v8 }
  0x93   :  { %v53_v10 = vpop.xlane.xlu0 %52 }
  0x94   :  { %v56_v11 = vmul.f32 0.03125, %v53_v10  ;;  %v59_v12 = vmul.f32 %v57_v9, %v57_v9 }
  0x96   :  { %v58_v13 = vsub.f32 %v3230_v4, %v56_v11  ;;  %v61_v14 = vsel %vm47_vm0, %v59_v12, 0.0 }
  0x97   :  { %62 = vadd.xlane.f32.xlu1 %v61_v14 }
  0x98   :  { %v60_v15 = vmul.f32 %v58_v13, %v58_v13 }
  0x9a   :  { %v64_v16 = vsel %vm47_vm0, %v60_v15, 0.0 }
  0x9b   :  { %65 = vadd.xlane.f32.xlu1 %v64_v16 }
 0x120   :  { %v63_v21 = vpop.xlane.xlu1 %62 }
 0x121   :  { %v67_v22 = vmul.f32 0.03125, %v63_v21 }
 0x123   :  { %v69_v23 = vadd.f32 1e-05, %v67_v22 }
 0x124   :  { %v66_v24 = vpop.xlane.xlu1 %65 }
 0x125   :  { %3057 = vrsqrt.f32 %v69_v23  ;;  %v68_v25 = vmul.f32 0.03125, %v66_v24 }
 0x127   :  { %v70_v27 = vadd.f32 1e-05, %v68_v25 }
 0x129   :  { %3059 = vrsqrt.f32 %v70_v27 }
 0x132   :  { %v3058_v33 = vpop.eup %3057 }
 0x133   :  { %v73_v34 = vmul.f32 %v3058_v33, %v57_v9 }
 0x135   :  { %v81_v36 = vmul.f32 %v79_v32, %v73_v34 }
 0x136   :  { %v3060_v37 = vpop.eup %3059 }
 0x137   :  { %v74_v38 = vmul.f32 %v3060_v37, %v58_v13  ;;  %v89_v39 = vadd.f32 %v87_v35, %v81_v36 }
 0x139   :  { %v82_v40 = vmul.f32 %v79_v32, %v74_v38  ;;  %2872 = vmatprep.mubr.msk.f32.mxu0 %vm47_vm0, %v89_v39 }
 0x13b   :  { %v90_v41 = vadd.f32 %v87_v35, %v82_v40 }
 0x13d   :  { %2873 = vmatmul.mubr.msk.f32.vlgmr.msra.gmra.mxu0 %vm47_vm0, %v90_v41 }
 0x13e   :  { %2887 = vmatprep.mubr.msk.f32.mxu0 %vm3166_vm1, %v3165_v42 }
 0x1fd   :  { %v3273_v43 = vpop.f32.mrf.mxu0 }
 0x1fe   :  { %180 = vrot.lane.b32.xlu1 %v3273_v43, %s3167_s22 }
 0x1ff   :  { %v3277_v44 = vpop.f32.mrf.mxu0 }
 0x200   :  { %178 = vrot.lane.b32.xlu0 %v3277_v44, %s3167_s22 }
 0x202   :  { %182 = vrot.lane.b32.xlu1 %v3277_v44, %s3168_s23 }
 0x206   :  { %259 = vrot.lane.b32.xlu1 %v3273_v43, %s3168_s23 }
 0x270   :  { %v3285_v45 = vpop.permute.xlu1 %180 }
 0x271   :  { %411 = vrot.lane.b32.xlu1 %v3285_v45, %s3168_s23 }
 0x272   :  { %v3289_v46 = vpop.permute.xlu0 %178 }
 0x273   :  { %335 = vrot.lane.b32.xlu0 %v3289_v46, %s3168_s23 }
 0x274   :  { %v183_v47 = vpop.permute.xlu1 %182 }
 0x275   :  { %2876 = vmatpush3.xpose.msk.msra.mxu1 %vm184_vm2, %v183_v47 }
 0x276   :  { %2880 = vmatprep.subr.mxu1 %v3165_v42 }
 0x278   :  { %2878 = vmatmul.mubr.msk.f32.vlgmr.msra.gmra.mxu1 %vm184_vm2, %v3277_v44  ;;  %v260_v48 = vpop.permute.xlu1 %259 }
 0x279   :  { %2881 = vmatpush3.xpose.msk.msra.mxu1 %vm184_vm2, %v260_v48  ;;  %2882 = vmatprep.mubr.msk.f32.mxu1 %vm3166_vm1, %v3165_v42  ;;  %v850_v48 = vld [vmem:[%s3804_s2] sm:$0xff] }
 0x27a   :  { %2890 = vmatprep.subr.mxu1 %v3165_v42 }
 0x27c   :  { %2883 = vmatmul.mubr.msk.f32.vlgmr.msra.gmra.mxu1 %vm184_vm2, %v3273_v43 }
 0x27d   :  { %2892 = vmatprep.mubr.msk.f32.mxu1 %vm3166_vm1, %v3165_v42 }
 0x2e3   :  { %v412_v49 = vpop.permute.xlu1 %411 }
 0x2e4   :  { %2891 = vmatpush3.xpose.msk.msra.mxu1 %vm184_vm2, %v412_v49 }
 0x2e5   :  { %v336_v50 = vpop.permute.xlu0 %335  ;;  %2900 = vmatprep.subr.mxu1 %v3165_v42 }
 0x2e6   :  { %2886 = vmatpush3.xpose.msk.msra.mxu0 %vm184_vm2, %v336_v50 }
 0x2e7   :  { %2893 = vmatmul.mubr.msk.f32.vlgmr.msra.gmra.mxu1 %vm184_vm2, %v3285_v45  ;;  %2895 = vmatprep.subr.mxu0 %v3165_v42 }
 0x2e8   :  { %2902 = vmatprep.mubr.msk.f32.mxu1 %vm3166_vm1, %v3165_v42 }
 0x2e9   :  { %2888 = vmatmul.mubr.msk.f32.vlgmr.msra.gmra.mxu0 %vm184_vm2, %v3289_v46 }
 0x2ea   :  { %2897 = vmatprep.mubr.msk.f32.mxu0 %vm3166_vm1, %v3165_v42 }
 0x338   :  { %v255_v51 = vpop.f32.mrf.mxu1 }
 0x339   :  { %v487_v52 = vmul.f32 0.25, %v255_v51 }
 0x33a   :  { %v2879_v53 = vpop.f32.mrf.mxu1 }
 0x33b   :  { %v492_v54 = vsel %vm491_vm3, %v487_v52, -inf }
 0x33c   :  { %v331_v55 = vpop.f32.mrf.mxu1  ;;  %493 = vmax.xlane.f32.xlu0 %v492_v54 }
 0x33d   :  { %v488_v56 = vmul.f32 0.25, %v331_v55 }
 0x33e   :  { %v2884_v57 = vpop.f32.mrf.mxu1 }
 0x33f   :  { %v495_v58 = vsel %vm491_vm3, %v488_v56, -inf }
 0x340   :  { %496 = vmax.xlane.f32.xlu1 %v495_v58 }
 0x3a7   :  { %v483_v59 = vpop.f32.mrf.mxu1 }
 0x3a8   :  { %v490_v0 = vmul.f32 0.25, %v483_v59 }
 0x3a9   :  { %v407_v60 = vpop.f32.mrf.mxu0  ;;  %v2894_v61 = vpop.f32.mrf.mxu1 }
 0x3aa   :  { %v489_v62 = vmul.f32 0.25, %v407_v60  ;;  %v501_v2 = vsel %vm491_vm3, %v490_v0, -inf }
 0x3ab   :  { %v2889_v63 = vpop.f32.mrf.mxu0 }
 0x3ac   :  { %v498_v1 = vsel %vm491_vm3, %v489_v62, -inf }
 0x3ad   :  { %499 = vmax.xlane.f32.xlu0 %v498_v1 }
 0x3b1   :  { %502 = vmax.xlane.f32.xlu0 %v501_v2 }
 0x3c5   :  { %v494_v5 = vpop.xlane.xlu0 %493 }
 0x3c6   :  { %v504_v6 = vsub.f32 %v487_v52, %v494_v5 }
 0x3c8   :  { %v508_v7 = vmul.f32 1.442695, %v504_v6 }
 0x3c9   :  { %v497_v8 = vpop.xlane.xlu1 %496 }
 0x3ca   :  { %3061 = vpow2.f32 %v508_v7  ;;  %v505_v9 = vsub.f32 %v488_v56, %v497_v8 }
 0x3cc   :  { %v510_v10 = vmul.f32 1.442695, %v505_v9 }
 0x3ce   :  { %3063 = vpow2.f32 %v510_v10 }
 0x3d7   :  { %v3062_v11 = vpop.eup %3061 }
 0x3d8   :  { %v516_v12 = vsel %vm491_vm3, %v3062_v11, 0.0 }
 0x3d9   :  { %517 = vadd.xlane.f32.xlu0 %v516_v12  ;;  %v982_v12 = vld [vmem:[%s3805_s3 + $0x18] sm:$0xff] }
 0x3db   :  { %v3064_v13 = vpop.eup %3063 }
 0x3dc   :  { %v519_v14 = vsel %vm491_vm3, %v3064_v13, 0.0 }
 0x3dd   :  { %520 = vadd.xlane.f32.xlu1 %v519_v14  ;;  %v980_v14 = vld [vmem:[%s3805_s3 + $0x8] sm:$0xff] }
 0x436   :  { %v500_v15 = vpop.xlane.xlu0 %499 }
 0x437   :  { %v506_v16 = vsub.f32 %v489_v62, %v500_v15  ;;  %v979_v15 = vld [vmem:[%s3805_s3] sm:$0xff] }
 0x439   :  { %v512_v17 = vmul.f32 1.442695, %v506_v16 }
 0x43a   :  { %v503_v18 = vpop.xlane.xlu0 %502 }
 0x43b   :  { %3065 = vpow2.f32 %v512_v17  ;;  %v507_v19 = vsub.f32 %v490_v0, %v503_v18 }
 0x43d   :  { %v514_v20 = vmul.f32 1.442695, %v507_v19 }
 0x43f   :  { %3067 = vpow2.f32 %v514_v20 }
 0x448   :  { %v3066_v21 = vpop.eup %3065 }
 0x449   :  { %v522_v22 = vsel %vm491_vm3, %v3066_v21, 0.0 }
 0x44a   :  { %523 = vadd.xlane.f32.xlu0 %v522_v22  ;;  %v2666_v22 = vld [vmem:[%s3807_s5 + $0x12] ss:$8 sm:$0x3] }
 0x44c   :  { %v3068_v23 = vpop.eup %3067 }
 0x44d   :  { %v525_v24 = vsel %vm491_vm3, %v3068_v23, 0.0 }
 0x44e   :  { %526 = vadd.xlane.f32.xlu1 %v525_v24  ;;  %v967_v24 = vrot.slane %v2666_v22, %v3255_v29 }
 0x45f   :  { %612 = vrot.lane.b32.xlu1 %v3273_v43, %s3169_s24 }
 0x460   :  { %536 = vrot.lane.b32.xlu0 %v3277_v44, %s3169_s24  ;;  %v853_v44 = vld [vmem:[%s3804_s2 + $0x18] sm:$0xff] }
 0x462   :  { %v518_v25 = vpop.xlane.xlu0 %517 }
 0x463   :  { %688 = vrot.lane.b32.xlu1 %v3289_v46, %s3169_s24  ;;  %3069 = vrcp.f32 %v518_v25  ;;  %v851_v46 = vld [vmem:[%s3804_s2 + $0x8] sm:$0xff] }
 0x466   :  { %v521_v26 = vpop.xlane.xlu1 %520 }
 0x467   :  { %764 = vrot.lane.b32.xlu1 %v3285_v45, %s3169_s24  ;;  %3071 = vrcp.f32 %v521_v26  ;;  %v852_v45 = vld [vmem:[%s3804_s2 + $0x10] sm:$0xff] }
 0x470   :  { %v3070_v30 = vpop.eup %3069 }
 0x471   :  { %v532_v33 = vmul.f32 %v3070_v30, %v3062_v11 }
 0x474   :  { %v3072_v34 = vpop.eup %3071 }
 0x475   :  { %v533_v36 = vmul.f32 %v3072_v34, %v3064_v13  ;;  %v981_v13 = vld [vmem:[%s3805_s3 + $0x10] sm:$0xff] }
 0x4d3   :  { %v524_v27 = vpop.xlane.xlu0 %523 }
 0x4d4   :  { %3073 = vrcp.f32 %v524_v27 }
 0x4d7   :  { %v527_v31 = vpop.xlane.xlu1 %526  ;;  %v537_v32 = vpop.permute.xlu0 %536 }
 0x4d8   :  { %3075 = vrcp.f32 %v527_v31  ;;  %2896 = vmatpush3.msra.mxu0 %v537_v32 }
 0x4d9   :  { %2898 = vmatmul.mubr.msk.f32.vlgmr.msra.gmra.mxu0 %vm491_vm3, %v532_v33  ;;  %2905 = vmatprep.subr.mxu0 %v3165_v42 }
 0x4da   :  { %2907 = vmatprep.mubr.msk.f32.mxu0 %vm3166_vm1, %v3165_v42 }
 0x4db   :  { %v613_v35 = vpop.permute.xlu1 %612 }
 0x4dc   :  { %2901 = vmatpush3.msra.mxu1 %v613_v35 }
 0x4dd   :  { %2903 = vmatmul.mubr.msk.f32.vlgmr.msra.gmra.mxu1 %vm491_vm3, %v533_v36  ;;  %2910 = vmatprep.subr.mxu1 %v3165_v42  ;;  %v1088_v36 = vld [vmem:[%s3806_s4 + $0x38] sm:$0xff] }
 0x4de   :  { %2912 = vmatprep.mubr.msk.f32.mxu1 %vm3166_vm1, %v3165_v42 }
 0x4df   :  { %v689_v37 = vpop.permute.xlu1 %688 }
 0x4e0   :  { %2906 = vmatpush3.msra.mxu0 %v689_v37  ;;  %v1087_v37 = vld [vmem:[%s3806_s4 + $0x30] sm:$0xff] }
 0x4e1   :  { %v3074_v38 = vpop.eup %3073  ;;  %2915 = vmatprep.subr.mxu0 %v853_v44 }
 0x4e2   :  { %v534_v39 = vmul.f32 %v3074_v38, %v3066_v21  ;;  %v1086_v38 = vld [vmem:[%s3806_s4 + $0x28] sm:$0xff] }
 0x4e3   :  { %v765_v40 = vpop.permute.xlu1 %764 }
 0x4e4   :  { %2908 = vmatmul.mubr.msk.f32.vlgmr.msra.gmra.mxu0 %vm491_vm3, %v534_v39  ;;  %2911 = vmatpush3.msra.mxu1 %v765_v40  ;;  %v1085_v39 = vld [vmem:[%s3806_s4 + $0x20] sm:$0xff]  ;;  %v1084_v40 = vld [vmem:[%s3806_s4 + $0x18] sm:$0xff] }
 0x4e5   :  { %v3076_v41 = vpop.eup %3075  ;;  %2916 = vmatpush3.msra.mxu0 %v853_v44  ;;  %v1081_v44 = vld [vmem:[%s3806_s4] sm:$0xff] }
 0x4e6   :  { %v535_v43 = vmul.f32 %v3076_v41, %v3068_v23  ;;  %2917 = vmatprep.subr.mxu0 %v852_v45  ;;  %v2667_v23 = vld [vmem:[%s3807_s5 + $0x13] ss:$8 sm:$0x3] }
 0x4e7   :  { %2918 = vmatpush3.msra.mxu0 %v852_v45  ;;  %v975_v27 = vrot.slane %v2667_v23, %v3255_v29  ;;  %v1083_v41 = vld [vmem:[%s3806_s4 + $0x10] sm:$0xff] }
 0x4e8   :  { %2913 = vmatmul.mubr.msk.f32.vlgmr.msra.gmra.mxu1 %vm491_vm3, %v535_v43  ;;  %2919 = vmatprep.subr.mxu0 %v851_v46  ;;  %v1082_v43 = vld [vmem:[%s3806_s4 + $0x8] sm:$0xff]  ;;  %v2668_v45 = vld [vmem:[%s3807_s5 + $0x14] ss:$8 sm:$0x3] }
 0x4e9   :  { %2920 = vmatpush3.msra.mxu0 %v851_v46  ;;  %v987_v46 = vrot.slane %v2668_v45, %v3255_v29 }
 0x4ea   :  { %2921 = vmatprep.subr.mxu0 %v850_v48 }
 0x4eb   :  { %2922 = vmatpush3.msra.mxu0 %v850_v48 }
 0x4ec   :  { %2926 = vmatprep.subr.mxu0 %v982_v12 }
 0x599   :  { %v608_v47 = vpop.f32.mrf.mxu0 }
 0x59b   :  { %v2899_v49 = vpop.f32.mrf.mxu0 }
 0x59d   :  { %v684_v50 = vpop.f32.mrf.mxu1 }
 0x59f   :  { %v2904_v51 = vpop.f32.mrf.mxu1 }
 0x5a4   :  { %v760_v52 = vpop.f32.mrf.mxu0 }
 0x5a5   :  { %842 = vrot.lane.b32.xlu0 %v760_v52, %s3170_s0 }
 0x5a6   :  { %v2909_v53 = vpop.f32.mrf.mxu0 }
 0x5a8   :  { %v836_v54 = vpop.f32.mrf.mxu1 }
 0x5a9   :  { %844 = vrot.lane.b32.xlu1 %v836_v54, %s3170_s0 }
 0x5aa   :  { %v2914_v55 = vpop.f32.mrf.mxu1 }
 0x617   :  { %v843_v56 = vpop.permute.xlu0 %842 }
 0x618   :  { %v848_v57 = vsel %vm184_vm2, %v608_v47, %v843_v56 }
 0x619   :  { %2923 = vmatprep.mubr.msk.f32.mxu0 %vm47_vm0, %v848_v57 }
 0x61b   :  { %v845_v58 = vpop.permute.xlu1 %844 }
 0x61c   :  { %v849_v59 = vsel %vm184_vm2, %v684_v50, %v845_v58 }
 0x61d   :  { %2924 = vmatmul.mubr.msk.f32.vlgmr.msra.gmra.mxu0 %vm47_vm0, %v849_v59 }
 0x61e   :  { %2927 = vmatpush3.msra.mxu0 %v982_v12 }
 0x61f   :  { %2928 = vmatprep.subr.mxu0 %v981_v13 }
 0x620   :  { %2929 = vmatpush3.msra.mxu0 %v981_v13 }
 0x621   :  { %2930 = vmatprep.subr.mxu0 %v980_v14 }
 0x622   :  { %2931 = vmatpush3.msra.mxu0 %v980_v14 }
 0x623   :  { %2932 = vmatprep.subr.mxu0 %v979_v15 }
 0x624   :  { %2933 = vmatpush3.msra.mxu0 %v979_v15 }
 0x625   :  { %2937 = vmatprep.subr.mxu0 %v1088_v36 }
 0x6dd   :  { %v2925_v60 = vpop.f32.mrf.mxu0 }
 0x6de   :  { %v3362_v61 = vadd.f32 %v2925_v60, %v3230_v4 }
 0x6df   :  { %v926_v62 = vpop.f32.mrf.mxu0 }
 0x6e0   :  { %v3365_v63 = vadd.f32 %v926_v62, %v3228_v3  ;;  %v940_v0 = vsel %vm47_vm0, %v3362_v61, 0.0  ;;  %v2669_v62 = vld [vmem:[%s3807_s5 + $0x15] ss:$8 sm:$0x3] }
 0x6e1   :  { %941 = vadd.xlane.f32.xlu1 %v940_v0  ;;  %v1177_v0 = vrot.slane %v2669_v62, %v3255_v29 }
 0x6e2   :  { %v937_v1 = vsel %vm47_vm0, %v3365_v63, 0.0 }
 0x6e3   :  { %938 = vadd.xlane.f32.xlu0 %v937_v1 }
 0x76a   :  { %v942_v2 = vpop.xlane.xlu1 %941 }
 0x76b   :  { %v944_v5 = vmul.f32 0.03125, %v942_v2 }
 0x76c   :  { %v939_v6 = vpop.xlane.xlu0 %938 }
 0x76d   :  { %v943_v7 = vmul.f32 0.03125, %v939_v6  ;;  %v946_v8 = vsub.f32 %v3362_v61, %v944_v5 }
 0x76f   :  { %v945_v4 = vsub.f32 %v3365_v63, %v943_v7  ;;  %v948_v10 = vmul.f32 %v946_v8, %v946_v8 }
 0x771   :  { %v947_v9 = vmul.f32 %v945_v4, %v945_v4  ;;  %v952_v11 = vsel %vm47_vm0, %v948_v10, 0.0 }
 0x773   :  { %v949_v3 = vsel %vm47_vm0, %v947_v9, 0.0 }
 0x774   :  { %950 = vadd.xlane.f32.xlu0 %v949_v3 }
 0x778   :  { %953 = vadd.xlane.f32.xlu0 %v952_v11 }
 0x7fd   :  { %v951_v16 = vpop.xlane.xlu0 %950 }
 0x7fe   :  { %v955_v17 = vmul.f32 0.03125, %v951_v16 }
 0x800   :  { %v957_v18 = vadd.f32 1e-05, %v955_v17  ;;  %v2699_v17 = vld [vmem:[%s3803_s1 + $0x38] sm:$0xff] }
 0x801   :  { %v954_v19 = vpop.xlane.xlu0 %953  ;;  %2956 = vmatprep.subr.mxu1 %v2699_v17 }
 0x802   :  { %3077 = vrsqrt.f32 %v957_v18  ;;  %v956_v20 = vmul.f32 0.03125, %v954_v19  ;;  %v2698_v18 = vld [vmem:[%s3803_s1 + $0x30] sm:$0xff]  ;;  %2957 = vmatpush3.msra.mxu1 %v2699_v17  ;;  %v2697_v19 = vld [vmem:[%s3803_s1 + $0x28] sm:$0xff] }
 0x803   :  { %2958 = vmatprep.subr.mxu1 %v2698_v18 }
 0x804   :  { %v958_v21 = vadd.f32 1e-05, %v956_v20  ;;  %2959 = vmatpush3.msra.mxu1 %v2698_v18  ;;  %v2696_v20 = vld [vmem:[%s3803_s1 + $0x20] sm:$0xff] }
 0x805   :  { %2960 = vmatprep.subr.mxu1 %v2697_v19 }
 0x806   :  { %3079 = vrsqrt.f32 %v958_v21  ;;  %2961 = vmatpush3.msra.mxu1 %v2697_v19 }
 0x807   :  { %2962 = vmatprep.subr.mxu1 %v2696_v20 }
 0x808   :  { %2963 = vmatpush3.msra.mxu1 %v2696_v20 }
 0x809   :  { %2967 = vmatprep.subr.mxu1 %v3165_v42 }
 0x80f   :  { %v3078_v25 = vpop.eup %3077 }
 0x810   :  { %v961_v26 = vmul.f32 %v3078_v25, %v945_v4 }
 0x812   :  { %v969_v30 = vmul.f32 %v967_v24, %v961_v26 }
 0x813   :  { %v3080_v31 = vpop.eup %3079 }
 0x814   :  { %v962_v32 = vmul.f32 %v3080_v31, %v946_v8  ;;  %v977_v33 = vadd.f32 %v975_v27, %v969_v30 }
 0x816   :  { %v970_v34 = vmul.f32 %v967_v24, %v962_v32  ;;  %2934 = vmatprep.mubr.msk.f32.mxu0 %vm47_vm0, %v977_v33  ;;  %v2691_v32 = vld [vmem:[%s3807_s5 + $0x17] ss:$8 sm:$0x3] }
 0x818   :  { %v978_v35 = vadd.f32 %v975_v27, %v970_v34  ;;  %v2690_v27 = vld [vmem:[%s3807_s5 + $0x16] ss:$8 sm:$0x3] }
 0x819   :  { %v1223_v31 = vrot.slane %v2690_v27, %v3255_v29 }
 0x81a   :  { %2935 = vmatmul.mubr.msk.f32.vlgmr.msra.gmra.mxu0 %vm47_vm0, %v978_v35 }
 0x81b   :  { %2938 = vmatpush3.msra.mxu0 %v1088_v36 }
 0x81c   :  { %2939 = vmatprep.subr.mxu0 %v1087_v37 }
 0x81d   :  { %2940 = vmatpush3.msra.mxu0 %v1087_v37  ;;  %v1231_v37 = vrot.slane %v2691_v32, %v3255_v29 }
 0x81e   :  { %2941 = vmatprep.subr.mxu0 %v1086_v38 }
 0x81f   :  { %2942 = vmatpush3.msra.mxu0 %v1086_v38 }
 0x820   :  { %2943 = vmatprep.subr.mxu0 %v1085_v39 }
 0x821   :  { %2944 = vmatpush3.msra.mxu0 %v1085_v39 }
 0x822   :  { %2945 = vmatprep.subr.mxu0 %v1084_v40 }
 0x823   :  { %2946 = vmatpush3.msra.mxu0 %v1084_v40 }
 0x824   :  { %2947 = vmatprep.subr.mxu0 %v1083_v41 }
 0x825   :  { %2948 = vmatpush3.msra.mxu0 %v1083_v41 }
 0x826   :  { %2949 = vmatprep.subr.mxu0 %v1082_v43 }
 0x827   :  { %2950 = vmatpush3.msra.mxu0 %v1082_v43 }
 0x828   :  { %2951 = vmatprep.subr.mxu0 %v1081_v44 }
 0x829   :  { %2952 = vmatpush3.msra.mxu0 %v1081_v44 }
 0x82a   :  { %2977 = vmatprep.subr.mxu0 %v3165_v42 }
 0x8da   :  { %v2936_v47 = vpop.f32.mrf.mxu0 }
 0x8db   :  { %v1067_v48 = vadd.f32 %v2936_v47, %v987_v46 }
 0x8dc   :  { %v1061_v49 = vpop.f32.mrf.mxu0 }
 0x8dd   :  { %v1074_v50 = vmul.f32 0.70710677, %v1067_v48  ;;  %v1062_v51 = vadd.f32 %v1061_v49, %v987_v46  ;;  %v1071_v58 = vmul.f32 0.5, %v1067_v48 }
 0x8df   :  { %3081 = verf.f32 %v1074_v50  ;;  %v1073_v52 = vmul.f32 0.70710677, %v1062_v51  ;;  %v1070_v56 = vmul.f32 0.5, %v1062_v51 }
 0x8e1   :  { %3083 = verf.f32 %v1073_v52 }
 0x8ec   :  { %v3082_v53 = vpop.eup %3081 }
 0x8ed   :  { %v1078_v55 = vadd.f32 1.0, %v3082_v53 }
 0x8ee   :  { %v3084_v54 = vpop.eup %3083 }
 0x8ef   :  { %v1077_v57 = vadd.f32 1.0, %v3084_v54  ;;  %v1080_v60 = vmul.f32 %v1078_v55, %v1071_v58 }
 0x8f1   :  { %v1079_v59 = vmul.f32 %v1077_v57, %v1070_v56 }
 0x8f3   :  { %2953 = vmatprep.mubr.msk.f32.mxu0 %vm1089_vm4, %v1079_v59 }
 0x8f4   :  { %2954 = vmatmul.mubr.msk.f32.vlgmr.msra.gmra.mxu0 %vm1089_vm4, %v1080_v60 }
 0x8f5   :  { %2979 = vmatprep.mubr.msk.f32.mxu0 %vm3166_vm1, %v3165_v42 }
 0x9b4   :  { %v2955_v1 = vpop.f32.mrf.mxu0 }
 0x9b5   :  { %v1172_v2 = vadd.f32 %v2955_v1, %v3362_v61 }
 0x9b6   :  { %v1162_v5 = vpop.f32.mrf.mxu0 }
 0x9b7   :  { %v3435_v6 = vadd.f32 %v1177_v0, %v1172_v2  ;;  %v1171_v7 = vadd.f32 %v1162_v5, %v3365_v63 }
 0x9b9   :  { %v3438_v8 = vadd.f32 %v1177_v0, %v1171_v7  ;;  %v1196_v4 = vsel %vm47_vm0, %v3435_v6, 0.0 }
 0x9ba   :  { %1197 = vadd.xlane.f32.xlu1 %v1196_v4 }
 0x9bb   :  { %v1193_v9 = vsel %vm47_vm0, %v3438_v8, 0.0 }
 0x9bc   :  { %1194 = vadd.xlane.f32.xlu0 %v1193_v9 }
 0xa43   :  { %v1198_v3 = vpop.xlane.xlu1 %1197 }
 0xa44   :  { %v1200_v10 = vmul.f32 0.03125, %v1198_v3 }
 0xa45   :  { %v1195_v11 = vpop.xlane.xlu0 %1194 }
 0xa46   :  { %v1202_v61 = vsub.f32 %v3435_v6, %v1200_v10  ;;  %v1199_v12 = vmul.f32 0.03125, %v1195_v11 }
 0xa48   :  { %v1201_v13 = vsub.f32 %v3438_v8, %v1199_v12  ;;  %v1204_v14 = vmul.f32 %v1202_v61, %v1202_v61 }
 0xa4a   :  { %v1208_v63 = vsel %vm47_vm0, %v1204_v14, 0.0  ;;  %v1203_v15 = vmul.f32 %v1201_v13, %v1201_v13 }
 0xa4b   :  { %1209 = vadd.xlane.f32.xlu1 %v1208_v63 }
 0xa4c   :  { %v1205_v16 = vsel %vm47_vm0, %v1203_v15, 0.0 }
 0xa4d   :  { %1206 = vadd.xlane.f32.xlu0 %v1205_v16 }
 0xad4   :  { %v1210_v21 = vpop.xlane.xlu1 %1209 }
 0xad5   :  { %v1212_v22 = vmul.f32 0.03125, %v1210_v21 }
 0xad6   :  { %v1207_v23 = vpop.xlane.xlu0 %1206 }
 0xad7   :  { %v1214_v24 = vadd.f32 1e-05, %v1212_v22  ;;  %v1211_v25 = vmul.f32 0.03125, %v1207_v23 }
 0xad9   :  { %3085 = vrsqrt.f32 %v1214_v24  ;;  %v1213_v26 = vadd.f32 1e-05, %v1211_v25 }
 0xadb   :  { %3087 = vrsqrt.f32 %v1213_v26 }
 0xae6   :  { %v3086_v30 = vpop.eup %3085 }
 0xae7   :  { %v1218_v33 = vmul.f32 %v3086_v30, %v1202_v61 }
 0xae8   :  { %v3088_v34 = vpop.eup %3087 }
 0xae9   :  { %v1217_v35 = vmul.f32 %v3088_v34, %v1201_v13  ;;  %v1226_v36 = vmul.f32 %v1223_v31, %v1218_v33 }
 0xaeb   :  { %v1225_v38 = vmul.f32 %v1223_v31, %v1217_v35  ;;  %v1234_v40 = vadd.f32 %v1231_v37, %v1226_v36 }
 0xaed   :  { %v1233_v39 = vadd.f32 %v1231_v37, %v1225_v38 }
 0xaef   :  { %2964 = vmatprep.mubr.msk.f32.mxu1 %vm47_vm0, %v1233_v39 }
 0xaf0   :  { %2965 = vmatmul.mubr.msk.f32.vlgmr.msra.gmra.mxu1 %vm47_vm0, %v1234_v40 }
 0xaf1   :  { %2969 = vmatprep.mubr.msk.f32.mxu1 %vm3166_vm1, %v3165_v42 }
 0xbb0   :  { %v3473_v41 = vpop.f32.mrf.mxu1 }
 0xbb1   :  { %1325 = vrot.lane.b32.xlu1 %v3473_v41, %s3167_s22 }
 0xbb2   :  { %v3477_v43 = vpop.f32.mrf.mxu1 }
 0xbb3   :  { %1323 = vrot.lane.b32.xlu0 %v3477_v43, %s3167_s22 }
 0xbb5   :  { %1327 = vrot.lane.b32.xlu1 %v3477_v43, %s3168_s23 }
 0xbb9   :  { %1403 = vrot.lane.b32.xlu1 %v3473_v41, %s3168_s23 }
 0xc23   :  { %v3485_v44 = vpop.permute.xlu1 %1325 }
 0xc24   :  { %1555 = vrot.lane.b32.xlu1 %v3485_v44, %s3168_s23 }
 0xc25   :  { %v3489_v45 = vpop.permute.xlu0 %1323 }
 0xc26   :  { %1479 = vrot.lane.b32.xlu0 %v3489_v45, %s3168_s23 }
 0xc27   :  { %v1328_v46 = vpop.permute.xlu1 %1327 }
 0xc28   :  { %2968 = vmatpush3.xpose.msk.msra.mxu1 %vm184_vm2, %v1328_v46  ;;  %v2714_v46 = vld [vmem:[%s3804_s2 + $0x20] sm:$0xff] }
 0xc29   :  { %2972 = vmatprep.subr.mxu1 %v3165_v42 }
 0xc2b   :  { %2970 = vmatmul.mubr.msk.f32.vlgmr.msra.gmra.mxu1 %vm184_vm2, %v3477_v43  ;;  %v1404_v47 = vpop.permute.xlu1 %1403 }
 0xc2c   :  { %2973 = vmatpush3.xpose.msk.msra.mxu1 %vm184_vm2, %v1404_v47  ;;  %2974 = vmatprep.mubr.msk.f32.mxu1 %vm3166_vm1, %v3165_v42 }
 0xc2d   :  { %2982 = vmatprep.subr.mxu1 %v3165_v42 }
 0xc2f   :  { %2975 = vmatmul.mubr.msk.f32.vlgmr.msra.gmra.mxu1 %vm184_vm2, %v3473_v41 }
 0xc30   :  { %2984 = vmatprep.mubr.msk.f32.mxu1 %vm3166_vm1, %v3165_v42 }
 0xc96   :  { %v1556_v48 = vpop.permute.xlu1 %1555 }
 0xc97   :  { %2983 = vmatpush3.xpose.msk.msra.mxu1 %vm184_vm2, %v1556_v48 }
 0xc98   :  { %v1480_v49 = vpop.permute.xlu0 %1479  ;;  %2992 = vmatprep.subr.mxu1 %v3165_v42 }
 0xc99   :  { %2978 = vmatpush3.xpose.msk.msra.mxu0 %vm184_vm2, %v1480_v49 }
 0xc9a   :  { %2985 = vmatmul.mubr.msk.f32.vlgmr.msra.gmra.mxu1 %vm184_vm2, %v3485_v44  ;;  %2987 = vmatprep.subr.mxu0 %v3165_v42 }
 0xc9b   :  { %2994 = vmatprep.mubr.msk.f32.mxu1 %vm3166_vm1, %v3165_v42 }
 0xc9c   :  { %2980 = vmatmul.mubr.msk.f32.vlgmr.msra.gmra.mxu0 %vm184_vm2, %v3489_v45 }
 0xc9d   :  { %2989 = vmatprep.mubr.msk.f32.mxu0 %vm3166_vm1, %v3165_v42 }
 0xceb   :  { %v1399_v50 = vpop.f32.mrf.mxu1 }
 0xcec   :  { %v1631_v51 = vmul.f32 0.25, %v1399_v50 }
 0xced   :  { %v2971_v52 = vpop.f32.mrf.mxu1 }
 0xcee   :  { %v1635_v53 = vsel %vm491_vm3, %v1631_v51, -inf }
 0xcef   :  { %v1475_v54 = vpop.f32.mrf.mxu1  ;;  %1636 = vmax.xlane.f32.xlu0 %v1635_v53 }
 0xcf0   :  { %v1632_v55 = vmul.f32 0.25, %v1475_v54 }
 0xcf1   :  { %v2976_v56 = vpop.f32.mrf.mxu1 }
 0xcf2   :  { %v1638_v57 = vsel %vm491_vm3, %v1632_v55, -inf }
 0xcf3   :  { %1639 = vmax.xlane.f32.xlu1 %v1638_v57 }
 0xd5a   :  { %v1627_v58 = vpop.f32.mrf.mxu1 }
 0xd5b   :  { %v1634_v1 = vmul.f32 0.25, %v1627_v58 }
 0xd5c   :  { %v1551_v59 = vpop.f32.mrf.mxu0  ;;  %v2986_v60 = vpop.f32.mrf.mxu1 }
 0xd5d   :  { %v1633_v62 = vmul.f32 0.25, %v1551_v59  ;;  %v1644_v5 = vsel %vm491_vm3, %v1634_v1, -inf }
 0xd5e   :  { %v2981_v0 = vpop.f32.mrf.mxu0 }
 0xd5f   :  { %v1641_v2 = vsel %vm491_vm3, %v1633_v62, -inf }
 0xd60   :  { %1642 = vmax.xlane.f32.xlu0 %v1641_v2 }
 0xd64   :  { %1645 = vmax.xlane.f32.xlu0 %v1644_v5 }
 0xd78   :  { %v1637_v7 = vpop.xlane.xlu0 %1636 }
 0xd79   :  { %v1647_v4 = vsub.f32 %v1631_v51, %v1637_v7 }
 0xd7b   :  { %v1651_v9 = vmul.f32 1.442695, %v1647_v4 }
 0xd7c   :  { %v1640_v3 = vpop.xlane.xlu1 %1639 }
 0xd7d   :  { %3089 = vpow2.f32 %v1651_v9  ;;  %v1648_v10 = vsub.f32 %v1632_v55, %v1640_v3 }
 0xd7f   :  { %v1653_v11 = vmul.f32 1.442695, %v1648_v10 }
 0xd81   :  { %3091 = vpow2.f32 %v1653_v11 }
 0xd8a   :  { %v3090_v61 = vpop.eup %3089 }
 0xd8b   :  { %v1659_v12 = vsel %vm491_vm3, %v3090_v61, 0.0 }
 0xd8c   :  { %1660 = vadd.xlane.f32.xlu0 %v1659_v12  ;;  %v2722_v12 = vld [vmem:[%s3805_s3 + $0x30] sm:$0xff] }
 0xd8e   :  { %v3092_v13 = vpop.eup %3091 }
 0xd8f   :  { %v1662_v14 = vsel %vm491_vm3, %v3092_v13, 0.0 }
 0xd90   :  { %1663 = vadd.xlane.f32.xlu1 %v1662_v14  ;;  %v2720_v14 = vld [vmem:[%s3805_s3 + $0x20] sm:$0xff] }
 0xde9   :  { %v1643_v63 = vpop.xlane.xlu0 %1642 }
 0xdea   :  { %v1649_v15 = vsub.f32 %v1633_v62, %v1643_v63 }
 0xdec   :  { %v1655_v16 = vmul.f32 1.442695, %v1649_v15 }
 0xded   :  { %v1646_v17 = vpop.xlane.xlu0 %1645 }
 0xdee   :  { %3093 = vpow2.f32 %v1655_v16  ;;  %v1650_v18 = vsub.f32 %v1634_v1, %v1646_v17 }
 0xdf0   :  { %v1657_v19 = vmul.f32 1.442695, %v1650_v18 }
 0xdf2   :  { %3095 = vpow2.f32 %v1657_v19 }
 0xdfb   :  { %v3094_v20 = vpop.eup %3093 }
 0xdfc   :  { %v1665_v21 = vsel %vm491_vm3, %v3094_v20, 0.0 }
 0xdfd   :  { %1666 = vadd.xlane.f32.xlu0 %v1665_v21  ;;  %v2693_v21 = vld [vmem:[%s3807_s5 + $0x21] ss:$8 sm:$0x3] }
 0xdff   :  { %v3096_v22 = vpop.eup %3095 }
 0xe00   :  { %v1668_v23 = vsel %vm491_vm3, %v3096_v22, 0.0 }
 0xe01   :  { %1669 = vadd.xlane.f32.xlu1 %v1668_v23 }
 0xe12   :  { %1755 = vrot.lane.b32.xlu1 %v3473_v41, %s3169_s24 }
 0xe13   :  { %1679 = vrot.lane.b32.xlu0 %v3477_v43, %s3169_s24  ;;  %v2717_v43 = vld [vmem:[%s3804_s2 + $0x38] sm:$0xff] }
 0xe15   :  { %v1661_v24 = vpop.xlane.xlu0 %1660 }
 0xe16   :  { %1831 = vrot.lane.b32.xlu1 %v3489_v45, %s3169_s24  ;;  %3097 = vrcp.f32 %v1661_v24 }
 0xe19   :  { %v1664_v25 = vpop.xlane.xlu1 %1663 }
 0xe1a   :  { %1907 = vrot.lane.b32.xlu1 %v3485_v44, %s3169_s24  ;;  %3099 = vrcp.f32 %v1664_v25  ;;  %v2715_v44 = vld [vmem:[%s3804_s2 + $0x28] sm:$0xff]  ;;  %v2119_v25 = vrot.slane %v2693_v21, %v3255_v29 }
 0xe1b   :  { %v2737_v21 = vld [vmem:[%s3807_s5 + $0x25] ss:$8 sm:$0x3] }
 0xe23   :  { %v3098_v27 = vpop.eup %3097 }
 0xe24   :  { %v1675_v32 = vmul.f32 %v3098_v27, %v3090_v61  ;;  %v2723_v61 = vld [vmem:[%s3805_s3 + $0x38] sm:$0xff] }
 0xe27   :  { %v3100_v33 = vpop.eup %3099 }
 0xe28   :  { %v1676_v35 = vmul.f32 %v3100_v33, %v3092_v13  ;;  %v2721_v13 = vld [vmem:[%s3805_s3 + $0x28] sm:$0xff] }
 0xe86   :  { %v1667_v26 = vpop.xlane.xlu0 %1666 }
 0xe87   :  { %3101 = vrcp.f32 %v1667_v26 }
 0xe8a   :  { %v1670_v30 = vpop.xlane.xlu1 %1669  ;;  %v1680_v31 = vpop.permute.xlu0 %1679 }
 0xe8b   :  { %3103 = vrcp.f32 %v1670_v30  ;;  %2988 = vmatpush3.msra.mxu0 %v1680_v31 }
 0xe8c   :  { %2990 = vmatmul.mubr.msk.f32.vlgmr.msra.gmra.mxu0 %vm491_vm3, %v1675_v32  ;;  %2997 = vmatprep.subr.mxu0 %v3165_v42 }
 0xe8d   :  { %2999 = vmatprep.mubr.msk.f32.mxu0 %vm3166_vm1, %v3165_v42 }
 0xe8e   :  { %v1756_v34 = vpop.permute.xlu1 %1755 }
 0xe8f   :  { %2993 = vmatpush3.msra.mxu1 %v1756_v34  ;;  %v2733_v34 = vld [vmem:[%s3806_s4 + $0x78] sm:$0xff] }
 0xe90   :  { %2995 = vmatmul.mubr.msk.f32.vlgmr.msra.gmra.mxu1 %vm491_vm3, %v1676_v35  ;;  %3002 = vmatprep.subr.mxu1 %v3165_v42  ;;  %v2732_v35 = vld [vmem:[%s3806_s4 + $0x70] sm:$0xff] }
 0xe91   :  { %3004 = vmatprep.mubr.msk.f32.mxu1 %vm3166_vm1, %v3165_v42  ;;  %v2716_v42 = vld [vmem:[%s3804_s2 + $0x30] sm:$0xff] }
 0xe92   :  { %v1832_v36 = vpop.permute.xlu1 %1831 }
 0xe93   :  { %2998 = vmatpush3.msra.mxu0 %v1832_v36  ;;  %v2731_v36 = vld [vmem:[%s3806_s4 + $0x68] sm:$0xff] }
 0xe94   :  { %v3102_v37 = vpop.eup %3101  ;;  %3007 = vmatprep.subr.mxu0 %v2717_v43 }
 0xe95   :  { %v1677_v38 = vmul.f32 %v3102_v37, %v3094_v20  ;;  %v2692_v20 = vld [vmem:[%s3807_s5 + $0x20] ss:$8 sm:$0x3] }
 0xe96   :  { %v1908_v39 = vpop.permute.xlu1 %1907  ;;  %v2730_v37 = vld [vmem:[%s3806_s4 + $0x60] sm:$0xff] }
 0xe97   :  { %3000 = vmatmul.mubr.msk.f32.vlgmr.msra.gmra.mxu0 %vm491_vm3, %v1677_v38  ;;  %3003 = vmatpush3.msra.mxu1 %v1908_v39  ;;  %v2729_v38 = vld [vmem:[%s3806_s4 + $0x58] sm:$0xff]  ;;  %v2728_v39 = vld [vmem:[%s3806_s4 + $0x50] sm:$0xff] }
 0xe98   :  { %v3104_v40 = vpop.eup %3103  ;;  %3008 = vmatpush3.msra.mxu0 %v2717_v43  ;;  %3018 = vmatprep.subr.mxu1 %v2723_v61  ;;  %v2694_v43 = vld [vmem:[%s3807_s5 + $0x22] ss:$8 sm:$0x3] }
 0xe99   :  { %v1678_v41 = vmul.f32 %v3104_v40, %v3096_v22  ;;  %3009 = vmatprep.subr.mxu0 %v2716_v42  ;;  %v2111_v22 = vrot.slane %v2692_v20, %v3255_v29  ;;  %v2727_v40 = vld [vmem:[%s3806_s4 + $0x48] sm:$0xff] }
 0xe9a   :  { %3010 = vmatpush3.msra.mxu0 %v2716_v42  ;;  %v2132_v42 = vrot.slane %v2694_v43, %v3255_v29  ;;  %v2736_v20 = vld [vmem:[%s3807_s5 + $0x24] ss:$8 sm:$0x3] }
 0xe9b   :  { %3005 = vmatmul.mubr.msk.f32.vlgmr.msra.gmra.mxu1 %vm491_vm3, %v1678_v41  ;;  %3011 = vmatprep.subr.mxu0 %v2715_v44  ;;  %v2726_v41 = vld [vmem:[%s3806_s4 + $0x40] sm:$0xff] }
 0xe9c   :  { %3012 = vmatpush3.msra.mxu0 %v2715_v44  ;;  %3019 = vmatpush3.msra.mxu1 %v2723_v61 }
 0xe9d   :  { %3013 = vmatprep.subr.mxu0 %v2714_v46  ;;  %3020 = vmatprep.subr.mxu1 %v2722_v12 }
 0xe9e   :  { %3014 = vmatpush3.msra.mxu0 %v2714_v46  ;;  %3021 = vmatpush3.msra.mxu1 %v2722_v12 }
 0xe9f   :  { %3022 = vmatprep.subr.mxu1 %v2721_v13  ;;  %3029 = vmatprep.subr.mxu0 %v2733_v34 }
 0xea0   :  { %3023 = vmatpush3.msra.mxu1 %v2721_v13 }
 0xea1   :  { %3024 = vmatprep.subr.mxu1 %v2720_v14 }
 0xea2   :  { %3025 = vmatpush3.msra.mxu1 %v2720_v14 }
 0xf4c   :  { %v1751_v45 = vpop.f32.mrf.mxu0 }
 0xf4e   :  { %v2991_v47 = vpop.f32.mrf.mxu0 }
 0xf50   :  { %v1827_v48 = vpop.f32.mrf.mxu1 }
 0xf52   :  { %v2996_v49 = vpop.f32.mrf.mxu1 }
 0xf57   :  { %v1903_v50 = vpop.f32.mrf.mxu0 }
 0xf58   :  { %1985 = vrot.lane.b32.xlu0 %v1903_v50, %s3170_s0 }
 0xf59   :  { %v3001_v51 = vpop.f32.mrf.mxu0 }
 0xf5b   :  { %v1979_v52 = vpop.f32.mrf.mxu1 }
 0xf5c   :  { %1987 = vrot.lane.b32.xlu1 %v1979_v52, %s3170_s0 }
 0xf5d   :  { %v3006_v53 = vpop.f32.mrf.mxu1 }
 0xfca   :  { %v1986_v54 = vpop.permute.xlu0 %1985 }
 0xfcb   :  { %v1991_v55 = vsel %vm184_vm2, %v1751_v45, %v1986_v54 }
 0xfcc   :  { %3015 = vmatprep.mubr.msk.f32.mxu0 %vm47_vm0, %v1991_v55 }
 0xfce   :  { %v1988_v56 = vpop.permute.xlu1 %1987 }
 0xfcf   :  { %v1992_v57 = vsel %vm184_vm2, %v1827_v48, %v1988_v56 }
 0xfd0   :  { %3016 = vmatmul.mubr.msk.f32.vlgmr.msra.gmra.mxu0 %vm47_vm0, %v1992_v57 }
 0xfd1   :  { %3030 = vmatpush3.msra.mxu0 %v2733_v34 }
 0xfd2   :  { %3031 = vmatprep.subr.mxu0 %v2732_v35 }
 0xfd3   :  { %3032 = vmatpush3.msra.mxu0 %v2732_v35 }
 0xfd4   :  { %3033 = vmatprep.subr.mxu0 %v2731_v36 }
 0xfd5   :  { %3034 = vmatpush3.msra.mxu0 %v2731_v36 }
 0xfd6   :  { %3035 = vmatprep.subr.mxu0 %v2730_v37 }
 0xfd7   :  { %3036 = vmatpush3.msra.mxu0 %v2730_v37 }
 0xfd8   :  { %3037 = vmatprep.subr.mxu0 %v2729_v38 }
 0xfd9   :  { %3038 = vmatpush3.msra.mxu0 %v2729_v38 }
 0xfda   :  { %3039 = vmatprep.subr.mxu0 %v2728_v39 }
 0xfdb   :  { %3040 = vmatpush3.msra.mxu0 %v2728_v39 }
 0xfdc   :  { %3041 = vmatprep.subr.mxu0 %v2727_v40 }
 0xfdd   :  { %3042 = vmatpush3.msra.mxu0 %v2727_v40 }
 0xfde   :  { %3043 = vmatprep.subr.mxu0 %v2726_v41 }
 0xfdf   :  { %3044 = vmatpush3.msra.mxu0 %v2726_v41 }
0x1090   :  { %v3017_v58 = vpop.f32.mrf.mxu0 }
0x1091   :  { %v3562_v59 = vadd.f32 %v3017_v58, %v3435_v6  ;;  %v2695_v58 = vld [vmem:[%s3807_s5 + $0x23] ss:$8 sm:$0x3] }
0x1092   :  { %v2070_v60 = vpop.f32.mrf.mxu0 }
0x1093   :  { %v3565_v62 = vadd.f32 %v2070_v60, %v3438_v8  ;;  %v2084_v0 = vsel %vm47_vm0, %v3562_v59, 0.0  ;;  %v2321_v60 = vrot.slane %v2695_v58, %v3255_v29  ;;  %v2558_v58 = vld [vmem:[%s3808_s6 + $0xc8] sm:$0xff] }
0x1094   :  { %2085 = vadd.xlane.f32.xlu1 %v2084_v0 }
0x1095   :  { %v2081_v1 = vsel %vm47_vm0, %v3565_v62, 0.0 }
0x1096   :  { %2082 = vadd.xlane.f32.xlu0 %v2081_v1 }
0x111d   :  { %v2086_v2 = vpop.xlane.xlu1 %2085 }
0x111e   :  { %v2088_v5 = vmul.f32 0.03125, %v2086_v2 }
0x111f   :  { %v2083_v7 = vpop.xlane.xlu0 %2082 }
0x1120   :  { %v2087_v4 = vmul.f32 0.03125, %v2083_v7  ;;  %v2090_v9 = vsub.f32 %v3562_v59, %v2088_v5 }
0x1122   :  { %v2089_v6 = vsub.f32 %v3565_v62, %v2087_v4  ;;  %v2092_v10 = vmul.f32 %v2090_v9, %v2090_v9 }
0x1124   :  { %v2091_v3 = vmul.f32 %v2089_v6, %v2089_v6  ;;  %v2096_v11 = vsel %vm47_vm0, %v2092_v10, 0.0 }
0x1126   :  { %v2093_v8 = vsel %vm47_vm0, %v2091_v3, 0.0 }
0x1127   :  { %2094 = vadd.xlane.f32.xlu0 %v2093_v8 }
0x112b   :  { %2097 = vadd.xlane.f32.xlu0 %v2096_v11 }
0x11b0   :  { %v2095_v63 = vpop.xlane.xlu0 %2094 }
0x11b1   :  { %v2099_v15 = vmul.f32 0.03125, %v2095_v63 }
0x11b3   :  { %v2101_v16 = vadd.f32 1e-05, %v2099_v15 }
0x11b4   :  { %v2098_v17 = vpop.xlane.xlu0 %2097 }
0x11b5   :  { %3105 = vrsqrt.f32 %v2101_v16  ;;  %v2100_v18 = vmul.f32 0.03125, %v2098_v17 }
0x11b7   :  { %v2102_v19 = vadd.f32 1e-05, %v2100_v18 }
0x11b9   :  { %3107 = vrsqrt.f32 %v2102_v19 }
0x11c2   :  { %v3106_v23 = vpop.eup %3105 }
0x11c3   :  { %v2105_v24 = vmul.f32 %v3106_v23, %v2089_v6 }
0x11c5   :  { %v2113_v26 = vmul.f32 %v2111_v22, %v2105_v24  ;;  %v2367_v24 = vrot.slane %v2737_v21, %v3255_v29 }
0x11c6   :  { %v3108_v27 = vpop.eup %3107 }
0x11c7   :  { %v2106_v30 = vmul.f32 %v3108_v27, %v2090_v9  ;;  %v2121_v31 = vadd.f32 %v2119_v25, %v2113_v26 }
0x11c9   :  { %v2114_v32 = vmul.f32 %v2111_v22, %v2106_v30  ;;  %3026 = vmatprep.mubr.msk.f32.mxu1 %vm47_vm0, %v2121_v31  ;;  %v2359_v22 = vrot.slane %v2736_v20, %v3255_v29 }
0x11cb   :  { %v2122_v33 = vadd.f32 %v2119_v25, %v2114_v32 }
0x11cd   :  { %3027 = vmatmul.mubr.msk.f32.vlgmr.msra.gmra.mxu1 %vm47_vm0, %v2122_v33 }
0x128d   :  { %v3028_v44 = vpop.f32.mrf.mxu1 }
0x128e   :  { %v2212_v45 = vadd.f32 %v3028_v44, %v2132_v42 }
0x128f   :  { %v2206_v46 = vpop.f32.mrf.mxu1 }
0x1290   :  { %v2218_v47 = vmul.f32 0.70710677, %v2212_v45  ;;  %v2207_v48 = vadd.f32 %v2206_v46, %v2132_v42  ;;  %v2216_v55 = vmul.f32 0.5, %v2212_v45  ;;  %v2564_v46 = vld [vmem:[%s3808_s6 + $0xf8] sm:$0xff] }
0x1291   :  { %2829 = vmatprep.subr.mxu1 %v2564_v46 }
0x1292   :  { %3109 = verf.f32 %v2218_v47  ;;  %v2217_v49 = vmul.f32 0.70710677, %v2207_v48  ;;  %v2215_v53 = vmul.f32 0.5, %v2207_v48  ;;  %v2548_v47 = vld [vmem:[%s3808_s6 + $0x78] sm:$0xff]  ;;  %v2563_v48 = vld [vmem:[%s3808_s6 + $0xf0] sm:$0xff] }
0x1293   :  { %2830 = vmatpush3.msra.mxu1 %v2548_v47 }
0x1294   :  { %3111 = verf.f32 %v2217_v49  ;;  %2831 = vmatprep.subr.mxu1 %v2563_v48  ;;  %v2547_v49 = vld [vmem:[%s3808_s6 + $0x70] sm:$0xff] }
0x1295   :  { %2832 = vmatpush3.msra.mxu1 %v2547_v49 }
0x129f   :  { %v3110_v50 = vpop.eup %3109 }
0x12a0   :  { %v2222_v52 = vadd.f32 1.0, %v3110_v50  ;;  %v2562_v50 = vld [vmem:[%s3808_s6 + $0xe8] sm:$0xff] }
0x12a1   :  { %v3112_v51 = vpop.eup %3111  ;;  %2833 = vmatprep.subr.mxu1 %v2562_v50 }
0x12a2   :  { %v2221_v54 = vadd.f32 1.0, %v3112_v51  ;;  %v2224_v57 = vmul.f32 %v2222_v52, %v2216_v55  ;;  %v2546_v51 = vld [vmem:[%s3808_s6 + $0x68] sm:$0xff]  ;;  %v2561_v52 = vld [vmem:[%s3808_s6 + $0xe0] sm:$0xff]  ;;  %v2544_v55 = vld [vmem:[%s3808_s6 + $0x58] sm:$0xff] }
0x12a3   :  { %2834 = vmatpush3.msra.mxu1 %v2546_v51 }
0x12a4   :  { %v2223_v56 = vmul.f32 %v2221_v54, %v2215_v53  ;;  %2835 = vmatprep.subr.mxu1 %v2561_v52  ;;  %v2545_v53 = vld [vmem:[%s3808_s6 + $0x60] sm:$0xff]  ;;  %v2560_v54 = vld [vmem:[%s3808_s6 + $0xd8] sm:$0xff] }
0x12a5   :  { %2836 = vmatpush3.msra.mxu1 %v2545_v53 }
0x12a6   :  { %3045 = vmatprep.mubr.msk.f32.mxu0 %vm1089_vm4, %v2223_v56  ;;  %2837 = vmatprep.subr.mxu1 %v2560_v54  ;;  %v2559_v56 = vld [vmem:[%s3808_s6 + $0xd0] sm:$0xff] }
0x12a7   :  { %3046 = vmatmul.mubr.msk.f32.vlgmr.msra.gmra.mxu0 %vm1089_vm4, %v2224_v57  ;;  %2838 = vmatpush3.msra.mxu1 %v2544_v55  ;;  %v2543_v57 = vld [vmem:[%s3808_s6 + $0x50] sm:$0xff] }
0x12a8   :  { %2839 = vmatprep.subr.mxu1 %v2559_v56 }
0x12a9   :  { %2840 = vmatpush3.msra.mxu1 %v2543_v57 }
0x12aa   :  { %2841 = vmatprep.subr.mxu1 %v2558_v58 }
0x1367   :  { %v3047_v0 = vpop.f32.mrf.mxu0 }
0x1368   :  { %v2316_v1 = vadd.f32 %v3047_v0, %v3562_v59  ;;  %v2557_v0 = vld [vmem:[%s3808_s6 + $0xc0] sm:$0xff] }
0x1369   :  { %v2306_v2 = vpop.f32.mrf.mxu0 }
0x136a   :  { %v2315_v5 = vadd.f32 %v2306_v2, %v3565_v62  ;;  %v2324_v7 = vadd.f32 %v2321_v60, %v2316_v1  ;;  %v2541_v1 = vld [vmem:[%s3808_s6 + $0x40] sm:$0xff]  ;;  %v2556_v2 = vld [vmem:[%s3808_s6 + $0xb8] sm:$0xff] }
0x136c   :  { %v2332_v4 = vsel %vm47_vm0, %v2324_v7, 0.0  ;;  %v2323_v9 = vadd.f32 %v2321_v60, %v2315_v5  ;;  %v2542_v60 = vld [vmem:[%s3808_s6 + $0x48] sm:$0xff]  ;;  %v2540_v5 = vld [vmem:[%s3808_s6 + $0x38] sm:$0xff] }
0x136d   :  { %2333 = vadd.xlane.f32.xlu0 %v2332_v4  ;;  %2842 = vmatpush3.msra.mxu1 %v2542_v60  ;;  %v2539_v4 = vld [vmem:[%s3808_s6 + $0x30] sm:$0xff] }
0x136e   :  { %v2329_v6 = vsel %vm47_vm0, %v2323_v9, 0.0  ;;  %2843 = vmatprep.subr.mxu1 %v2557_v0 }
0x136f   :  { %2330 = vadd.xlane.f32.xlu1 %v2329_v6  ;;  %2844 = vmatpush3.msra.mxu1 %v2541_v1  ;;  %v2538_v6 = vld [vmem:[%s3808_s6 + $0x28] sm:$0xff] }
0x1370   :  { %2845 = vmatprep.subr.mxu1 %v2556_v2 }
0x1371   :  { %2846 = vmatpush3.msra.mxu1 %v2540_v5 }
0x13f6   :  { %v2334_v3 = vpop.xlane.xlu0 %2333 }
0x13f7   :  { %v2336_v8 = vmul.f32 0.03125, %v2334_v3  ;;  %v2553_v3 = vld [vmem:[%s3808_s6 + $0xa0] sm:$0xff] }
0x13f8   :  { %v2331_v10 = vpop.xlane.xlu1 %2330 }
0x13f9   :  { %v2338_v11 = vsub.f32 %v2324_v7, %v2336_v8  ;;  %v2335_v61 = vmul.f32 0.03125, %v2331_v10  ;;  %v2555_v7 = vld [vmem:[%s3808_s6 + $0xb0] sm:$0xff]  ;;  %v2537_v8 = vld [vmem:[%s3808_s6 + $0x20] sm:$0xff]  ;;  %v2552_v10 = vld [vmem:[%s3808_s6 + $0x98] sm:$0xff] }
0x13fa   :  { %2847 = vmatprep.subr.mxu1 %v2555_v7 }
0x13fb   :  { %v2337_v12 = vsub.f32 %v2323_v9, %v2335_v61  ;;  %v2340_v13 = vmul.f32 %v2338_v11, %v2338_v11  ;;  %2848 = vmatpush3.msra.mxu1 %v2539_v4  ;;  %v2554_v9 = vld [vmem:[%s3808_s6 + $0xa8] sm:$0xff]  ;;  %v2551_v61 = vld [vmem:[%s3808_s6 + $0x90] sm:$0xff] }
0x13fc   :  { %2849 = vmatprep.subr.mxu1 %v2554_v9 }
0x13fd   :  { %v2344_v59 = vsel %vm47_vm0, %v2340_v13, 0.0  ;;  %v2339_v14 = vmul.f32 %v2337_v12, %v2337_v12  ;;  %2850 = vmatpush3.msra.mxu1 %v2538_v6  ;;  %v2550_v13 = vld [vmem:[%s3808_s6 + $0x88] sm:$0xff] }
0x13fe   :  { %2345 = vadd.xlane.f32.xlu0 %v2344_v59  ;;  %2851 = vmatprep.subr.mxu1 %v2553_v3  ;;  %v2534_v59 = vld [vmem:[%s3808_s6 + $0x8] sm:$0xff] }
0x13ff   :  { %v2341_v62 = vsel %vm47_vm0, %v2339_v14, 0.0  ;;  %2852 = vmatpush3.msra.mxu1 %v2537_v8  ;;  %v2549_v14 = vld [vmem:[%s3808_s6 + $0x80] sm:$0xff] }
0x1400   :  { %2342 = vadd.xlane.f32.xlu1 %v2341_v62  ;;  %2853 = vmatprep.subr.mxu1 %v2552_v10  ;;  %v2533_v62 = vld [vmem:[%s3808_s6] sm:$0xff] }
0x1487   :  { %v2346_v63 = vpop.xlane.xlu0 %2345 }
0x1488   :  { %v2348_v15 = vmul.f32 0.03125, %v2346_v63 }
0x1489   :  { %v2343_v16 = vpop.xlane.xlu1 %2342 }
0x148a   :  { %v2350_v17 = vadd.f32 1e-05, %v2348_v15  ;;  %v2347_v18 = vmul.f32 0.03125, %v2343_v16 }
0x148c   :  { %3113 = vrsqrt.f32 %v2350_v17  ;;  %v2349_v19 = vadd.f32 1e-05, %v2347_v18 }
0x148e   :  { %3115 = vrsqrt.f32 %v2349_v19 }
0x1499   :  { %v3114_v23 = vpop.eup %3113 }
0x149a   :  { %v2354_v25 = vmul.f32 %v3114_v23, %v2338_v11  ;;  %v2536_v11 = vld [vmem:[%s3808_s6 + $0x18] sm:$0xff] }
0x149b   :  { %v3116_v27 = vpop.eup %3115  ;;  %2854 = vmatpush3.msra.mxu1 %v2536_v11 }
0x149c   :  { %v2362_v26 = vmul.f32 %v2359_v22, %v2354_v25  ;;  %v2353_v31 = vmul.f32 %v3116_v27, %v2337_v12  ;;  %2855 = vmatprep.subr.mxu1 %v2551_v61  ;;  %v2535_v12 = vld [vmem:[%s3808_s6 + $0x10] sm:$0xff] }
0x149d   :  { %2856 = vmatpush3.msra.mxu1 %v2535_v12 }
0x149e   :  { %v3645_v30 = vadd.f32 %v2367_v24, %v2362_v26  ;;  %v2361_v34 = vmul.f32 %v2359_v22, %v2353_v31  ;;  %2857 = vmatprep.subr.mxu1 %v2550_v13 }
0x149f   :  { %2858 = vmatpush3.msra.mxu1 %v2534_v59 }
0x14a0   :  { %v2420_v32 = vrot.slane %v3645_v30, 5  ;;  %v2406_v33 = vrot.slane %v3645_v30, 1  ;;  %v2410_v35 = vrot.slane %v3645_v30, 2  ;;  %v2424_v36 = vrot.slane %v3645_v30, 6  ;;  %2859 = vmatprep.subr.mxu1 %v2549_v14 }
0x14a1   :  { %v3653_v37 = vadd.f32 %v2367_v24, %v2361_v34  ;;  %v2414_v38 = vrot.slane %v3645_v30, 3  ;;  %v2428_v39 = vrot.slane %v3645_v30, 7  ;;  %2860 = vmatpush3.msra.mxu1 %v2533_v62  ;;  %v2418_v20 = vrot.slane %v3645_v30, 4 }
0x14a2   :  { %2421 = vrot.lane.b32.xlu0 %v2420_v32, %s3171_s13  ;;  %2407 = vrot.lane.b32.xlu1 %v2406_v33, %s3171_s13 }
0x14a3   :  { %v2386_v40 = vrot.slane %v3653_v37, 5  ;;  %v2372_v41 = vrot.slane %v3653_v37, 1  ;;  %v2390_v43 = vrot.slane %v3653_v37, 6  ;;  %v2394_v42 = vrot.slane %v3653_v37, 7 }
0x14a4   :  { %v2376_v44 = vrot.slane %v3653_v37, 2  ;;  %v2380_v45 = vrot.slane %v3653_v37, 3  ;;  %v2384_v26 = vrot.slane %v3653_v37, 4 }
0x14a6   :  { %2411 = vrot.lane.b32.xlu0 %v2410_v35, %s3169_s24  ;;  %2425 = vrot.lane.b32.xlu1 %v2424_v36, %s3169_s24 }
0x14aa   :  { %2415 = vrot.lane.b32.xlu0 %v2414_v38, %s3168_s23  ;;  %2429 = vrot.lane.b32.xlu1 %v2428_v39, %s3168_s23 }
0x14ae   :  { %2387 = vrot.lane.b32.xlu1 %v2386_v40, %s3171_s13  ;;  %2373 = vrot.lane.b32.xlu0 %v2372_v41, %s3171_s13 }
0x14b2   :  { %2391 = vrot.lane.b32.xlu1 %v2390_v43, %s3169_s24  ;;  %2395 = vrot.lane.b32.xlu0 %v2394_v42, %s3168_s23 }
0x14b6   :  { %2377 = vrot.lane.b32.xlu1 %v2376_v44, %s3169_s24 }
0x14ba   :  { %2381 = vrot.lane.b32.xlu1 %v2380_v45, %s3168_s23 }
0x1514   :  { %v2422_v63 = vpop.permute.xlu0 %2421  ;;  %v2408_v15 = vpop.permute.xlu1 %2407 }
0x1515   :  { %v2435_v21 = vsel %vm47_vm0, %v2418_v20, %v2422_v63  ;;  %v2432_v36 = vsel %vm47_vm0, %v3645_v30, %v2408_v15  ;;  %v2502_v20 = vsub.s32 1, %v3252_v28 }
0x1518   :  { %v2412_v16 = vpop.permute.xlu0 %2411  ;;  %v2426_v17 = vpop.permute.xlu1 %2425 }
0x1519   :  { %v2436_v24 = vsel %vm1089_vm4, %v2435_v21, %v2426_v17  ;;  %v2433_v39 = vsel %vm1089_vm4, %v2432_v36, %v2412_v16  ;;  %v2738_v21 = vld [vmem:[%s3807_s5 + $0x26] ss:$8 sm:$0x3] }
0x151c   :  { %v2416_v18 = vpop.permute.xlu0 %2415  ;;  %v2430_v19 = vpop.permute.xlu1 %2429 }
0x151d   :  { %v2437_v25 = vsel %vm2400_vm5, %v2436_v24, %v2430_v19  ;;  %v2434_v43 = vsel %vm2400_vm5, %v2433_v39, %v2416_v18 }
0x151e   :  { %v2441_v33 = vrot.slane %v2437_v25, 7  ;;  %v2440_v46 = vrot.slane %v2434_v43, 7 }
0x1520   :  { %v2374_v22 = vpop.permute.xlu0 %2373  ;;  %v2388_v23 = vpop.permute.xlu1 %2387 }
0x1521   :  { %v2402_v27 = vsel %vm47_vm0, %v2384_v26, %v2388_v23  ;;  %v2398_v44 = vsel %vm47_vm0, %v3653_v37, %v2374_v22  ;;  %v2739_v22 = vld [vmem:[%s3807_s5 + $0x27] ss:$8 sm:$0x3]  ;;  %v2503_v23 = vrot.slane %v2738_v21, %v2502_v20  ;;  %s2642_s5 = sshll.u32 %s3172_s25, 4  ;;  %s2643_s5 = int_to_ptr.vmem [resolvable:$true] %s2642_s5 }
0x1522   :  { %v2516_v26 = vrot.slane %v2739_v22, %v2502_v20  ;;  %v2512_v28 = vrot.slane %v2739_v22, %v3255_v29  ;;  %s3121_s2 = scalar_lea.vmem %s2643_s5, 64  ;;  %p3126_p1 = scmp.lt.s32.totalorder %s2643_s5, %s2643_s5 }
0x1523   :  { %p3122_p0 = scmp.ne.s32.totalorder %s2643_s5, %s3121_s2  ;;  %p3127_p2 = scmp.lt.s32.totalorder %s3121_s2, %s3121_s2 }
0x1524   :  { %v2396_v31 = vpop.permute.xlu0 %2395  ;;  %v2392_v32 = vpop.permute.xlu1 %2391 }
0x1525   :  { %v2403_v34 = vsel %vm1089_vm4, %v2402_v27, %v2392_v32  ;;  %v2499_v32 = vrot.slane %v2738_v21, %v3255_v29  ;;  %p3128_p3 = por %p3127_p2, %p3126_p1 }
0x1526   :  { %v2404_v35 = vsel %vm2400_vm5, %v2403_v34, %v2396_v31 }
0x1527   :  { %v2446_v38 = vsel %vm2444_vm6, %v2404_v35, %v2441_v33  ;;  %p3129_p4 = pnand %p3128_p3, %p3122_p0 }
0x1528   :  { %v2459_v40 = vsel %vm2451_vm7, %v2446_v38, 0.0  ;;  %v2378_v41 = vpop.permute.xlu1 %2377 }
0x1529   :  { %v2460_v42 = vrot.slane %v2459_v40, 4  ;;  %v2399_v47 = vsel %vm1089_vm4, %v2398_v44, %v2378_v41 }
0x152b   :  { %v2461_v45 = vadd.f32 %v2460_v42, %v2459_v40 }
0x152c   :  { %v2382_v48 = vpop.permute.xlu1 %2381 }
0x152d   :  { %v2462_v49 = vrot.slane %v2461_v45, 2  ;;  %v2401_v30 = vsel %vm2400_vm5, %v2399_v47, %v2382_v48 }
0x152e   :  { %v2445_v50 = vsel %vm2444_vm6, %v2401_v30, %v2440_v46 }
0x152f   :  { %v2463_v51 = vadd.f32 %v2462_v49, %v2461_v45  ;;  %v2452_v52 = vsel %vm2451_vm7, %v2445_v50, 0.0 }
0x1530   :  { %v2453_v53 = vrot.slane %v2452_v52, 4 }
0x1531   :  { %v2464_v54 = vrot.slane %v2463_v51, 1 }
0x1532   :  { %v2454_v55 = vadd.f32 %v2453_v53, %v2452_v52 }
0x1533   :  { %v2465_v56 = vadd.f32 %v2464_v54, %v2463_v51 }
0x1534   :  { %v2455_v57 = vrot.slane %v2454_v55, 2 }
0x1535   :  { %v2468_v58 = vmul.f32 0.5, %v2465_v56 }
0x1536   :  { %v2456_v37 = vadd.f32 %v2455_v57, %v2454_v55 }
0x1537   :  { %v2470_v60 = vsub.f32 %v2446_v38, %v2468_v58 }
0x1538   :  { %v2457_v0 = vrot.slane %v2456_v37, 1 }
0x1539   :  { %v2472_v1 = vmul.f32 %v2470_v60, %v2470_v60 }
0x153a   :  { %v2458_v2 = vadd.f32 %v2457_v0, %v2456_v37 }
0x153b   :  { %v2480_v5 = vsel %vm2451_vm7, %v2472_v1, 0.0 }
0x153c   :  { %v2481_v7 = vrot.slane %v2480_v5, 4  ;;  %v2467_v4 = vmul.f32 0.5, %v2458_v2 }
0x153e   :  { %v2482_v9 = vadd.f32 %v2481_v7, %v2480_v5  ;;  %v2469_v6 = vsub.f32 %v2445_v50, %v2467_v4 }
0x1540   :  { %v2483_v3 = vrot.slane %v2482_v9, 2  ;;  %v2471_v8 = vmul.f32 %v2469_v6, %v2469_v6 }
0x1542   :  { %v2484_v10 = vadd.f32 %v2483_v3, %v2482_v9  ;;  %v2473_v11 = vsel %vm2451_vm7, %v2471_v8, 0.0 }
0x1543   :  { %v2474_v61 = vrot.slane %v2473_v11, 4 }
0x1544   :  { %v2485_v12 = vrot.slane %v2484_v10, 1 }
0x1545   :  { %v2475_v13 = vadd.f32 %v2474_v61, %v2473_v11 }
0x1546   :  { %v2486_v59 = vadd.f32 %v2485_v12, %v2484_v10 }
0x1547   :  { %v2476_v14 = vrot.slane %v2475_v13, 2 }
0x1548   :  { %v2488_v62 = vmul.f32 0.5, %v2486_v59 }
0x1549   :  { %v2477_v63 = vadd.f32 %v2476_v14, %v2475_v13 }
0x154a   :  { %v2490_v15 = vadd.f32 1e-05, %v2488_v62 }
0x154b   :  { %v2478_v16 = vrot.slane %v2477_v63, 1 }
0x154c   :  { %3117 = vrsqrt.f32 %v2490_v15 }
0x154d   :  { %v2479_v17 = vadd.f32 %v2478_v16, %v2477_v63 }
0x154f   :  { %v2487_v18 = vmul.f32 0.5, %v2479_v17 }
0x1551   :  { %v2489_v19 = vadd.f32 1e-05, %v2487_v18 }
0x1553   :  { %3119 = vrsqrt.f32 %v2489_v19 }
0x1559   :  { %v3118_v24 = vpop.eup %3117 }
0x155a   :  { %v2494_v25 = vmul.f32 %v3118_v24, %v2470_v60 }
0x155c   :  { %v2507_v27 = vmul.f32 %v2503_v23, %v2494_v25 }
0x155e   :  { %v2520_v31 = vadd.f32 %v2516_v26, %v2507_v27 }
0x1560   :  { %v3120_v33 = vpop.eup %3119  ;;  %2629 = vmatprep.mubr.f32.mxu1 %v2520_v31 }
0x1561   :  { %v2493_v34 = vmul.f32 %v3120_v33, %v2469_v6 }
0x1563   :  { %v2506_v35 = vmul.f32 %v2499_v32, %v2493_v34 }
0x1565   :  { %v2519_v36 = vadd.f32 %v2512_v28, %v2506_v35 }
0x1567   :  { %2630 = vmatmul.mubr.f32.vlgmr.msra.gmra.mxu1 %v2519_v36  ;;  %v2523_v38 = vcombine.low %v2519_v36, %v2520_v31 }
0x1569   :  { %2740 = vst.sshfl [vmem:[#allocation2] sm:$0x33 pattern:$0x76325410] %v2523_v38 }
0x156a   :  { %3132 = shalt.err (!%p3129_p4)
}
0x156b   :  { %2645 = dma.vmem_to_hbm [thread:$0]  %s2643_s5, 64, %s3809_s7, [#allocation3]  }
0x156c   :  { %s3173_s27 = smov [#allocation4]  }
0x156d   :  { %s2652_s28 = sshll.u32 %s3173_s27, 4  ;;  %s2653_s28 = int_to_ptr.vmem [resolvable:$true] %s2652_s28 }
0x156e   :  { %s3141_s29 = scalar_lea.vmem %s2653_s28, 32  ;;  %p3146_p6 = scmp.lt.s32.totalorder %s2653_s28, %s2653_s28 }
0x156f   :  { %p3142_p5 = scmp.ne.s32.totalorder %s2653_s28, %s3141_s29  ;;  %p3147_p7 = scmp.lt.s32.totalorder %s3141_s29, %s3141_s29 }
0x1571   :  { %p3148_p8 = por %p3147_p7, %p3146_p6 }
0x1573   :  { %p3149_p9 = pnand %p3148_p8, %p3142_p5 }
0x1627   :  { %v2861_v29 = vpop.f32.mrf.mxu1 }
0x1629   :  { %v2862_v39 = vpop.f32.mrf.mxu1 }
0x162a   :  { %v2863_v40 = vadd.f32 %v2862_v39, %v2861_v29 }
0x162c   :  { %2635 = vst [vmem:[#allocation4] sm:$0x3] %v2863_v40 }
0x162d   :  { %3152 = shalt.err (!%p3149_p9)
}
0x162e   :  { %2655 = dma.vmem_to_hbm [thread:$0]  %s2653_s28, 32, %s3810_s8, [#allocation5]  }
0x162f   :  { %3161 = dma.done.wait [#allocation3], 64  }
0x1630   :  { %3162 = vsyncadd [#allocation3], 4294967232 }
0x1631   :  { %3163 = dma.done.wait [#allocation5], 32  }
0x1632   :  { %3164 = vsyncadd [#allocation5], 4294967264 }
0x1633   :  { %2662 = vsyncpa [#allocation3], 1 }
0x1634   :  { %2663 = vsyncpa [#allocation5], 1 }

</bundles_post_ra>
